<compile_context>
chip_gen: v6e
topology: v6e:2x2x1
jax: 0.10.0
libtpu: 0.0.40
codegen_flags: <defaults>
</compile_context>

<pallas_src>
import math
import functools

import jax
import jax.numpy as jnp
from jax import lax
from jax.experimental import pallas as pl
from jax.experimental.pallas import tpu as pltpu

EPS = 1e-5  # nn.LayerNorm default


def _layernorm(h, g, b):
    mu = jnp.mean(h, axis=-1, keepdims=True)
    var = jnp.mean((h - mu) ** 2, axis=-1, keepdims=True)
    return (h - mu) * lax.rsqrt(var + EPS) * g + b


def _gelu(x):
    c = math.sqrt(2.0 / math.pi)
    return 0.5 * x * (1.0 + jnp.tanh(c * (x + 0.044715 * x * x * x)))


def _wdot(x, w):
    """Matmul against a (possibly bf16) streamed weight, f32 accumulation."""
    return jnp.dot(x.astype(w.dtype), w, preferred_element_type=jnp.float32)


# ----------------------------------------------------------------------------
# The fused kernel: input stage -> L encoder layers -> attention pooling head.
# grid = (batch_tiles, num_layers); activation carried in VMEM scratch.
# ----------------------------------------------------------------------------
def fused_transformer_kernel(
        x_ref, w_in_ref, b_in_ref, g_in_ref, be_in_ref, pe_ref,
        wq_ref, bq_ref, wk_ref, bk_ref, wv_ref, bv_ref,
        wo_ref, bo_ref, g1_ref, b1_ref,
        w1_ref, bf1_ref, w2_ref, bf2_ref, g2_ref, b2_ref,
        gf_ref, bf_ref, wa1_ref, ba1_ref, wa2_ref, ba2_ref,
        o_ref, act_ref, *, nhead, d_model):
    l = pl.program_id(1)
    n_layers = pl.num_programs(1)

    TB, S, D = act_ref.shape
    R = TB * S
    hd = D // nhead
    scale = 1.0 / math.sqrt(hd)

    # ---- input stage (only at layer 0): proj + LN + *sqrt(D) + PE -----------
    @pl.when(l == 0)
    def _():
        xf = x_ref[...].reshape(R, x_ref.shape[-1])
        h = _wdot(xf, w_in_ref[...]) + b_in_ref[...]
        h = _layernorm(h, g_in_ref[...], be_in_ref[...]) * math.sqrt(d_model)
        # dropout is identity in eval mode; PE table (S, D) broadcasts over TB
        act_ref[...] = h.reshape(TB, S, D) + pe_ref[...]

    # ---- encoder layer l (post-norm, eval mode, no mask) --------------------
    x2 = act_ref[...].reshape(R, D)

    q = (_wdot(x2, wq_ref[0]) + bq_ref[0]).reshape(TB, S, D)
    k = (_wdot(x2, wk_ref[0]) + bk_ref[0]).reshape(TB, S, D)
    v = (_wdot(x2, wv_ref[0]) + bv_ref[0]).reshape(TB, S, D)

    wo = wo_ref[0]
    attn = jnp.zeros((R, D), jnp.float32)
    for h in range(nhead):  # static unroll; concat folded into the Wo accumulation
        sl = slice(h * hd, (h + 1) * hd)
        s = jnp.einsum('bqd,bkd->bqk', q[:, :, sl], k[:, :, sl],
                       preferred_element_type=jnp.float32) * scale      # (TB, S, S)
        s = s - jnp.max(s, axis=-1, keepdims=True)
        p = jnp.exp(s)
        p = p / jnp.sum(p, axis=-1, keepdims=True)                      # exact softmax
        ctx = jnp.einsum('bqk,bkd->bqd', p, v[:, :, sl],
                         preferred_element_type=jnp.float32)            # (TB, S, hd)
        attn = attn + _wdot(ctx.reshape(R, hd), wo[sl, :])
    attn = attn + bo_ref[0]

    y = _layernorm(x2 + attn, g1_ref[0], b1_ref[0])

    ff = _wdot(y, w1_ref[0]) + bf1_ref[0]
    ff = _gelu(ff)
    ff = _wdot(ff, w2_ref[0]) + bf2_ref[0]
    ynew = _layernorm(y + ff, g2_ref[0], b2_ref[0])
    act_ref[...] = ynew.reshape(TB, S, D)

    # ---- pooling head (only after the last layer) ---------------------------
    @pl.when(l == n_layers - 1)
    def _():
        yf = _layernorm(ynew, gf_ref[...], bf_ref[...])                  # final enc norm
        hdn = jnp.tanh(_wdot(yf, wa1_ref[...]) + ba1_ref[...])           # (R, D//2)
        sc = (jnp.dot(hdn, wa2_ref[...], preferred_element_type=jnp.float32)
              + ba2_ref[...]).reshape(TB, S, 1)
        sc = sc - jnp.max(sc, axis=1, keepdims=True)
        w = jnp.exp(sc)
        w = w / jnp.sum(w, axis=1, keepdims=True)                        # softmax over seq
        o_ref[...] = jnp.sum(w * yf.reshape(TB, S, D), axis=1, keepdims=True)


# ----------------------------------------------------------------------------
# Wrapper
# ----------------------------------------------------------------------------
def _vmem_limit_bytes():
    cap = 128 * 1024 * 1024
    try:
        cap = int(pltpu.get_tpu_info().vmem_capacity_bytes)
    except Exception:
        pass
    # ~75% of physical VMEM with a hard ceiling; >=32 MiB floor.
    return max(32 * 1024 * 1024, min((cap * 3) // 4, 100 * 1024 * 1024))


def _choose_tb(B, S):
    """Batch-fold tile: amortize per-layer weight DMA over TB*S rows while keeping
    >= 2 blocks on the parallel batch axis when possible (v7x dual TensorCore)."""
    divs = [t for t in range(1, B + 1) if B % t == 0]
    divs = [t for t in divs if t * S <= 1024] or [1]
    multi = [t for t in divs if B // t >= 2]
    big_multi = [t for t in multi if t * S >= 256]
    if big_multi:
        return max(big_multi)
    if multi and max(divs) * S <= 256:
        return max(multi)
    return max(divs)


def transformer_forward(x, params, pe, nhead):
    B, S, F = x.shape
    D = params["w_in"].shape[1]
    enc = params["enc"]
    L = enc["wq"].shape[0]

    TB = _choose_tb(B, S)
    nbt = B // TB

    # bf16 weight streaming for the big matrices; biases / LN params / PE in f32.
    bf16 = jnp.bfloat16
    w_in = params["w_in"].astype(bf16)
    wa1 = params["wa1"].astype(bf16)
    enc_ops = dict(enc)
    for n in ("wq", "wk", "wv", "wo", "w1", "w2"):
        enc_ops[n] = enc[n].astype(bf16)

    shared_pre = [w_in, params["b_in"], params["g_in"], params["be_in"], pe]
    enc_order = ["wq", "bq", "wk", "bk", "wv", "bv", "wo", "bo", "g1", "b1",
                 "w1", "bf1", "w2", "bf2", "g2", "b2"]
    enc_list = [enc_ops[n] for n in enc_order]
    shared_post = [params["g_f"], params["b_f"], wa1, params["ba1"],
                   params["wa2"], params["ba2"]]

    def shared_spec(a):
        nd = a.ndim
        return pl.BlockSpec(a.shape, lambda b, l, _nd=nd: (0,) * _nd)

    def stacked_spec(a):
        nd = a.ndim
        return pl.BlockSpec((1,) + a.shape[1:],
                            lambda b, l, _nd=nd: (l,) + (0,) * (_nd - 1))

    in_specs = ([pl.BlockSpec((TB, S, F), lambda b, l: (b, 0, 0))]
                + [shared_spec(a) for a in shared_pre]
                + [stacked_spec(a) for a in enc_list]
                + [shared_spec(a) for a in shared_post])

    out = pl.pallas_call(
        functools.partial(fused_transformer_kernel, nhead=nhead, d_model=D),
        out_shape=jax.ShapeDtypeStruct((B, 1, D), jnp.float32),
        grid_spec=pltpu.PrefetchScalarGridSpec(
            num_scalar_prefetch=0,
            grid=(nbt, L),
            in_specs=in_specs,
            out_specs=pl.BlockSpec((TB, 1, D), lambda b, l: (b, 0, 0)),
            scratch_shapes=[pltpu.VMEM((TB, S, D), jnp.float32)]),
        compiler_params=pltpu.CompilerParams(
            dimension_semantics=("parallel", "arbitrary"),
            vmem_limit_bytes=_vmem_limit_bytes()),
    )(x, *shared_pre, *enc_list, *shared_post)

    # output_dim=None (module default) -> no output_proj; result is (B, d_model)
    return out[:, 0, :]


# ----------------------------------------------------------------------------
# Parameter construction (Xavier-uniform like the PyTorch init), per-layer
# weights stacked along a leading L axis for l-indexed BlockSpec streaming.
# ----------------------------------------------------------------------------
def _xavier(key, fan_in, fan_out, shape):
    bound = math.sqrt(6.0 / (fan_in + fan_out))
    return jax.random.uniform(key, shape, jnp.float32, minval=-bound, maxval=bound)


def build_params(key, feature_dim, d_model, nhead, num_layers):
    del nhead  # head split happens inside the kernel
    dff = 4 * d_model
    dh = d_model // 2
    L, D = num_layers, d_model
    keys = iter(jax.random.split(key, 16))

    return {
        "w_in": _xavier(next(keys), feature_dim, D, (feature_dim, D)),
        "b_in": jnp.zeros((1, D), jnp.float32),
        "g_in": jnp.ones((1, D), jnp.float32),
        "be_in": jnp.zeros((1, D), jnp.float32),
        "g_f": jnp.ones((1, D), jnp.float32),
        "b_f": jnp.zeros((1, D), jnp.float32),
        "wa1": _xavier(next(keys), D, dh, (D, dh)),
        "ba1": jnp.zeros((1, dh), jnp.float32),
        "wa2": _xavier(next(keys), dh, 1, (dh, 1)),
        "ba2": jnp.zeros((1, 1), jnp.float32),
        "enc": {
            "wq": _xavier(next(keys), D, D, (L, D, D)),
            "bq": jnp.zeros((L, 1, D), jnp.float32),
            "wk": _xavier(next(keys), D, D, (L, D, D)),
            "bk": jnp.zeros((L, 1, D), jnp.float32),
            "wv": _xavier(next(keys), D, D, (L, D, D)),
            "bv": jnp.zeros((L, 1, D), jnp.float32),
            "wo": _xavier(next(keys), D, D, (L, D, D)),
            "bo": jnp.zeros((L, 1, D), jnp.float32),
            "g1": jnp.ones((L, 1, D), jnp.float32),
            "b1": jnp.zeros((L, 1, D), jnp.float32),
            "w1": _xavier(next(keys), D, dff, (L, D, dff)),
            "bf1": jnp.zeros((L, 1, dff), jnp.float32),
            "w2": _xavier(next(keys), dff, D, (L, dff, D)),
            "bf2": jnp.zeros((L, 1, D), jnp.float32),
            "g2": jnp.ones((L, 1, D), jnp.float32),
            "b2": jnp.zeros((L, 1, D), jnp.float32),
        },
    }


def make_pos_encoding(seq_len, d_model):
    pos = jnp.arange(seq_len, dtype=jnp.float32)[:, None]
    div = jnp.exp(jnp.arange(0, d_model, 2, dtype=jnp.float32)
                  * (-math.log(10000.0) / d_model))
    pe = jnp.zeros((seq_len, d_model), jnp.float32)
    pe = pe.at[:, 0::2].set(jnp.sin(pos * div))
    pe = pe.at[:, 1::2].set(jnp.cos(pos * div))
    return pe


if __name__ == "__main__":
    B, S, F = 2, 8, 16        # batch, seq_len, feature_dim
    D, H, L = 32, 4, 2        # d_model, nhead, num_layers

    key = jax.random.PRNGKey(0)
    k_params, k_x = jax.random.split(key)

    params = build_params(k_params, F, D, H, L)
    pe = make_pos_encoding(S, D)
    x = jax.random.normal(k_x, (B, S, F), jnp.float32)

    out = transformer_forward(x, params, pe, H)
    out = jax.block_until_ready(out)
    assert out.shape == (B, D), out.shape
    assert bool(jnp.all(jnp.isfinite(out)))
    print("KERNEL_OK")
</pallas_src>

<mosaic_0001>
module attributes {stable_mosaic.version = 11 : i64} {
  func.func @fused_transformer_kernel(%arg0: i32, %arg1: i32, %arg2: memref<1x8x16xf32, #tpu.memory_space<vmem>>, %arg3: memref<16x32xbf16, #tpu.memory_space<vmem>>, %arg4: memref<1x32xf32, #tpu.memory_space<vmem>>, %arg5: memref<1x32xf32, #tpu.memory_space<vmem>>, %arg6: memref<1x32xf32, #tpu.memory_space<vmem>>, %arg7: memref<8x32xf32, #tpu.memory_space<vmem>>, %arg8: memref<1x32x32xbf16, #tpu.memory_space<vmem>>, %arg9: memref<1x1x32xf32, #tpu.memory_space<vmem>>, %arg10: memref<1x32x32xbf16, #tpu.memory_space<vmem>>, %arg11: memref<1x1x32xf32, #tpu.memory_space<vmem>>, %arg12: memref<1x32x32xbf16, #tpu.memory_space<vmem>>, %arg13: memref<1x1x32xf32, #tpu.memory_space<vmem>>, %arg14: memref<1x32x32xbf16, #tpu.memory_space<vmem>>, %arg15: memref<1x1x32xf32, #tpu.memory_space<vmem>>, %arg16: memref<1x1x32xf32, #tpu.memory_space<vmem>>, %arg17: memref<1x1x32xf32, #tpu.memory_space<vmem>>, %arg18: memref<1x32x128xbf16, #tpu.memory_space<vmem>>, %arg19: memref<1x1x128xf32, #tpu.memory_space<vmem>>, %arg20: memref<1x128x32xbf16, #tpu.memory_space<vmem>>, %arg21: memref<1x1x32xf32, #tpu.memory_space<vmem>>, %arg22: memref<1x1x32xf32, #tpu.memory_space<vmem>>, %arg23: memref<1x1x32xf32, #tpu.memory_space<vmem>>, %arg24: memref<1x32xf32, #tpu.memory_space<vmem>>, %arg25: memref<1x32xf32, #tpu.memory_space<vmem>>, %arg26: memref<32x16xbf16, #tpu.memory_space<vmem>>, %arg27: memref<1x16xf32, #tpu.memory_space<vmem>>, %arg28: memref<16x1xf32, #tpu.memory_space<vmem>>, %arg29: memref<1x1xf32, #tpu.memory_space<vmem>>, %arg30: memref<1x1x32xf32, #tpu.memory_space<vmem>>, %arg31: memref<1x8x32xf32, #tpu.memory_space<vmem>>) attributes {dimension_semantics = [#tpu.dimension_semantics<parallel>, #tpu.dimension_semantics<arbitrary>], iteration_bounds = array<i64: 2, 2>, scalar_prefetch = 0 : i64, scratch_operands = 1 : i64, tpu.core_type = #tpu.core_type<tc>, window_params = [{transform_indices = @transform_0, window_bounds = array<i64: 1, 8, 16>}, {pipeline_mode = #tpu.pipeline_mode<synchronous>, transform_indices = @transform_1, window_bounds = array<i64: 16, 32>}, {pipeline_mode = #tpu.pipeline_mode<synchronous>, transform_indices = @transform_2, window_bounds = array<i64: 1, 32>}, {pipeline_mode = #tpu.pipeline_mode<synchronous>, transform_indices = @transform_3, window_bounds = array<i64: 1, 32>}, {pipeline_mode = #tpu.pipeline_mode<synchronous>, transform_indices = @transform_4, window_bounds = array<i64: 1, 32>}, {pipeline_mode = #tpu.pipeline_mode<synchronous>, transform_indices = @transform_5, window_bounds = array<i64: 8, 32>}, {transform_indices = @transform_6, window_bounds = array<i64: 1, 32, 32>}, {transform_indices = @transform_7, window_bounds = array<i64: 1, 1, 32>}, {transform_indices = @transform_8, window_bounds = array<i64: 1, 32, 32>}, {transform_indices = @transform_9, window_bounds = array<i64: 1, 1, 32>}, {transform_indices = @transform_10, window_bounds = array<i64: 1, 32, 32>}, {transform_indices = @transform_11, window_bounds = array<i64: 1, 1, 32>}, {transform_indices = @transform_12, window_bounds = array<i64: 1, 32, 32>}, {transform_indices = @transform_13, window_bounds = array<i64: 1, 1, 32>}, {transform_indices = @transform_14, window_bounds = array<i64: 1, 1, 32>}, {transform_indices = @transform_15, window_bounds = array<i64: 1, 1, 32>}, {transform_indices = @transform_16, window_bounds = array<i64: 1, 32, 128>}, {transform_indices = @transform_17, window_bounds = array<i64: 1, 1, 128>}, {transform_indices = @transform_18, window_bounds = array<i64: 1, 128, 32>}, {transform_indices = @transform_19, window_bounds = array<i64: 1, 1, 32>}, {transform_indices = @transform_20, window_bounds = array<i64: 1, 1, 32>}, {transform_indices = @transform_21, window_bounds = array<i64: 1, 1, 32>}, {pipeline_mode = #tpu.pipeline_mode<synchronous>, transform_indices = @transform_22, window_bounds = array<i64: 1, 32>}, {pipeline_mode = #tpu.pipeline_mode<synchronous>, transform_indices = @transform_23, window_bounds = array<i64: 1, 32>}, {pipeline_mode = #tpu.pipeline_mode<synchronous>, transform_indices = @transform_24, window_bounds = array<i64: 32, 16>}, {pipeline_mode = #tpu.pipeline_mode<synchronous>, transform_indices = @transform_25, window_bounds = array<i64: 1, 16>}, {pipeline_mode = #tpu.pipeline_mode<synchronous>, transform_indices = @transform_26, window_bounds = array<i64: 16, 1>}, {pipeline_mode = #tpu.pipeline_mode<synchronous>, transform_indices = @transform_27, window_bounds = array<i64: 1, 1>}, {transform_indices = @transform_28, window_bounds = array<i64: 1, 1, 32>}]} {
    %c0_i32 = arith.constant 0 : i32
    %0 = arith.cmpi eq, %arg1, %c0_i32 : i32
    %1 = arith.extui %0 : i1 to i32
    %c0_i32_0 = arith.constant 0 : i32
    %2 = arith.cmpi ne, %1, %c0_i32_0 : i32
    scf.if %2 {
      %c0_98 = arith.constant 0 : index
      %c0_99 = arith.constant 0 : index
      %c0_100 = arith.constant 0 : index
      %211 = vector.load %arg2[%c0_98, %c0_99, %c0_100] : memref<1x8x16xf32, #tpu.memory_space<vmem>>, vector<1x8x16xf32>
      %212 = vector.shape_cast %211 : vector<1x8x16xf32> to vector<8x16xf32>
      %c0_101 = arith.constant 0 : index
      %c0_102 = arith.constant 0 : index
      %213 = vector.load %arg3[%c0_101, %c0_102] : memref<16x32xbf16, #tpu.memory_space<vmem>>, vector<16x32xbf16>
      %214 = arith.truncf %212 : vector<8x16xf32> to vector<8x16xbf16>
      %cst_103 = arith.constant dense<0.000000e+00> : vector<8x32xf32>
      %215 = tpu.matmul %214, %213, %cst_103 {dimension_numbers = #tpu.dot_dimension_numbers<[1], [0], [0], [1], [0, 0, 1, 1], [], []>} : vector<8x16xbf16>, vector<16x32xbf16>, vector<8x32xf32> -> vector<8x32xf32>
      %c0_104 = arith.constant 0 : index
      %c0_105 = arith.constant 0 : index
      %216 = vector.load %arg4[%c0_104, %c0_105] : memref<1x32xf32, #tpu.memory_space<vmem>>, vector<1x32xf32>
      %217 = vector.broadcast %216 : vector<1x32xf32> to vector<8x32xf32>
      %218 = arith.addf %215, %217 : vector<8x32xf32>
      %c0_106 = arith.constant 0 : index
      %c0_107 = arith.constant 0 : index
      %219 = vector.load %arg5[%c0_106, %c0_107] : memref<1x32xf32, #tpu.memory_space<vmem>>, vector<1x32xf32>
      %c0_108 = arith.constant 0 : index
      %c0_109 = arith.constant 0 : index
      %220 = vector.load %arg6[%c0_108, %c0_109] : memref<1x32xf32, #tpu.memory_space<vmem>>, vector<1x32xf32>
      %cst_110 = arith.constant dense<0.000000e+00> : vector<8xf32>
      %221 = vector.multi_reduction <add>, %218, %cst_110 [1] : vector<8x32xf32> to vector<8xf32>
      %222 = vector.shape_cast %221 : vector<8xf32> to vector<8x1xf32>
      %cst_111 = arith.constant 3.200000e+01 : f32
      %223 = vector.broadcast %cst_111 : f32 to vector<8x1xf32>
      %224 = arith.divf %222, %223 : vector<8x1xf32>
      %225 = vector.broadcast %224 : vector<8x1xf32> to vector<8x32xf32>
      %226 = arith.subf %218, %225 : vector<8x32xf32>
      %227 = arith.mulf %226, %226 : vector<8x32xf32>
      %cst_112 = arith.constant dense<0.000000e+00> : vector<8xf32>
      %228 = vector.multi_reduction <add>, %227, %cst_112 [1] : vector<8x32xf32> to vector<8xf32>
      %229 = vector.shape_cast %228 : vector<8xf32> to vector<8x1xf32>
      %cst_113 = arith.constant 3.200000e+01 : f32
      %230 = vector.broadcast %cst_113 : f32 to vector<8x1xf32>
      %231 = arith.divf %229, %230 : vector<8x1xf32>
      %232 = vector.broadcast %224 : vector<8x1xf32> to vector<8x32xf32>
      %233 = arith.subf %218, %232 : vector<8x32xf32>
      %cst_114 = arith.constant 9.99999974E-6 : f32
      %234 = vector.broadcast %cst_114 : f32 to vector<8x1xf32>
      %235 = arith.addf %231, %234 : vector<8x1xf32>
      %236 = math.rsqrt %235 : vector<8x1xf32>
      %237 = vector.broadcast %236 : vector<8x1xf32> to vector<8x32xf32>
      %238 = arith.mulf %233, %237 : vector<8x32xf32>
      %239 = vector.broadcast %219 : vector<1x32xf32> to vector<8x32xf32>
      %240 = arith.mulf %238, %239 : vector<8x32xf32>
      %241 = vector.broadcast %220 : vector<1x32xf32> to vector<8x32xf32>
      %242 = arith.addf %240, %241 : vector<8x32xf32>
      %cst_115 = arith.constant 5.65685415 : f32
      %243 = vector.broadcast %cst_115 : f32 to vector<8x32xf32>
      %244 = arith.mulf %242, %243 : vector<8x32xf32>
      %245 = vector.shape_cast %244 : vector<8x32xf32> to vector<1x8x32xf32>
      %c0_116 = arith.constant 0 : index
      %c0_117 = arith.constant 0 : index
      %246 = vector.load %arg7[%c0_116, %c0_117] : memref<8x32xf32, #tpu.memory_space<vmem>>, vector<8x32xf32>
      %247 = vector.shape_cast %246 : vector<8x32xf32> to vector<1x8x32xf32>
      %248 = arith.addf %245, %247 : vector<1x8x32xf32>
      %c0_118 = arith.constant 0 : index
      %c0_119 = arith.constant 0 : index
      %c0_120 = arith.constant 0 : index
      %249 = vector.load %arg31[%c0_118, %c0_119, %c0_120] : memref<1x8x32xf32, #tpu.memory_space<vmem>>, vector<1x8x32xf32>
      tpu.vector_store %arg31[%c0_118, %c0_119, %c0_120], %248 {strides = array<i32>} : memref<1x8x32xf32, #tpu.memory_space<vmem>>, vector<1x8x32xf32>,
    } else {
    }
    %c0 = arith.constant 0 : index
    %c0_1 = arith.constant 0 : index
    %c0_2 = arith.constant 0 : index
    %3 = vector.load %arg31[%c0, %c0_1, %c0_2] : memref<1x8x32xf32, #tpu.memory_space<vmem>>, vector<1x8x32xf32>
    %4 = vector.shape_cast %3 : vector<1x8x32xf32> to vector<8x32xf32>
    %c0_3 = arith.constant 0 : index
    %c0_4 = arith.constant 0 : index
    %c0_5 = arith.constant 0 : index
    %5 = vector.load %arg8[%c0_3, %c0_4, %c0_5] : memref<1x32x32xbf16, #tpu.memory_space<vmem>>, vector<1x32x32xbf16>
    %6 = vector.shape_cast %5 : vector<1x32x32xbf16> to vector<32x32xbf16>
    %7 = arith.truncf %4 : vector<8x32xf32> to vector<8x32xbf16>
    %cst = arith.constant dense<0.000000e+00> : vector<8x32xf32>
    %8 = tpu.matmul %7, %6, %cst {dimension_numbers = #tpu.dot_dimension_numbers<[1], [0], [0], [1], [0, 0, 1, 1], [], []>} : vector<8x32xbf16>, vector<32x32xbf16>, vector<8x32xf32> -> vector<8x32xf32>
    %c0_6 = arith.constant 0 : index
    %c0_7 = arith.constant 0 : index
    %c0_8 = arith.constant 0 : index
    %9 = vector.load %arg9[%c0_6, %c0_7, %c0_8] : memref<1x1x32xf32, #tpu.memory_space<vmem>>, vector<1x1x32xf32>
    %10 = vector.shape_cast %9 : vector<1x1x32xf32> to vector<1x32xf32>
    %11 = vector.broadcast %10 : vector<1x32xf32> to vector<8x32xf32>
    %12 = arith.addf %8, %11 : vector<8x32xf32>
    %13 = vector.shape_cast %12 : vector<8x32xf32> to vector<1x8x32xf32>
    %c0_9 = arith.constant 0 : index
    %c0_10 = arith.constant 0 : index
    %c0_11 = arith.constant 0 : index
    %14 = vector.load %arg10[%c0_9, %c0_10, %c0_11] : memref<1x32x32xbf16, #tpu.memory_space<vmem>>, vector<1x32x32xbf16>
    %15 = vector.shape_cast %14 : vector<1x32x32xbf16> to vector<32x32xbf16>
    %16 = arith.truncf %4 : vector<8x32xf32> to vector<8x32xbf16>
    %cst_12 = arith.constant dense<0.000000e+00> : vector<8x32xf32>
    %17 = tpu.matmul %16, %15, %cst_12 {dimension_numbers = #tpu.dot_dimension_numbers<[1], [0], [0], [1], [0, 0, 1, 1], [], []>} : vector<8x32xbf16>, vector<32x32xbf16>, vector<8x32xf32> -> vector<8x32xf32>
    %c0_13 = arith.constant 0 : index
    %c0_14 = arith.constant 0 : index
    %c0_15 = arith.constant 0 : index
    %18 = vector.load %arg11[%c0_13, %c0_14, %c0_15] : memref<1x1x32xf32, #tpu.memory_space<vmem>>, vector<1x1x32xf32>
    %19 = vector.shape_cast %18 : vector<1x1x32xf32> to vector<1x32xf32>
    %20 = vector.broadcast %19 : vector<1x32xf32> to vector<8x32xf32>
    %21 = arith.addf %17, %20 : vector<8x32xf32>
    %22 = vector.shape_cast %21 : vector<8x32xf32> to vector<1x8x32xf32>
    %c0_16 = arith.constant 0 : index
    %c0_17 = arith.constant 0 : index
    %c0_18 = arith.constant 0 : index
    %23 = vector.load %arg12[%c0_16, %c0_17, %c0_18] : memref<1x32x32xbf16, #tpu.memory_space<vmem>>, vector<1x32x32xbf16>
    %24 = vector.shape_cast %23 : vector<1x32x32xbf16> to vector<32x32xbf16>
    %25 = arith.truncf %4 : vector<8x32xf32> to vector<8x32xbf16>
    %cst_19 = arith.constant dense<0.000000e+00> : vector<8x32xf32>
    %26 = tpu.matmul %25, %24, %cst_19 {dimension_numbers = #tpu.dot_dimension_numbers<[1], [0], [0], [1], [0, 0, 1, 1], [], []>} : vector<8x32xbf16>, vector<32x32xbf16>, vector<8x32xf32> -> vector<8x32xf32>
    %c0_20 = arith.constant 0 : index
    %c0_21 = arith.constant 0 : index
    %c0_22 = arith.constant 0 : index
    %27 = vector.load %arg13[%c0_20, %c0_21, %c0_22] : memref<1x1x32xf32, #tpu.memory_space<vmem>>, vector<1x1x32xf32>
    %28 = vector.shape_cast %27 : vector<1x1x32xf32> to vector<1x32xf32>
    %29 = vector.broadcast %28 : vector<1x32xf32> to vector<8x32xf32>
    %30 = arith.addf %26, %29 : vector<8x32xf32>
    %31 = vector.shape_cast %30 : vector<8x32xf32> to vector<1x8x32xf32>
    %c0_23 = arith.constant 0 : index
    %c0_24 = arith.constant 0 : index
    %c0_25 = arith.constant 0 : index
    %32 = vector.load %arg14[%c0_23, %c0_24, %c0_25] : memref<1x32x32xbf16, #tpu.memory_space<vmem>>, vector<1x32x32xbf16>
    %33 = vector.shape_cast %32 : vector<1x32x32xbf16> to vector<32x32xbf16>
    %cst_26 = arith.constant 0.000000e+00 : f32
    %34 = vector.broadcast %cst_26 : f32 to vector<8x32xf32>
    %35 = vector.extract_strided_slice %13 {offsets = [0, 0, 0], sizes = [1, 8, 8], strides = [1, 1, 1]} : vector<1x8x32xf32> to vector<1x8x8xf32>
    %36 = vector.extract_strided_slice %22 {offsets = [0, 0, 0], sizes = [1, 8, 8], strides = [1, 1, 1]} : vector<1x8x32xf32> to vector<1x8x8xf32>
    "tpu.trace_start"() <{level = 10 : i32, message = "bqd,bkd->bqk"}> : () -> ()
    %cst_27 = arith.constant dense<0.000000e+00> : vector<1x8x8xf32>
    %37 = tpu.matmul %35, %36, %cst_27 {dimension_numbers = #tpu.dot_dimension_numbers<[2], [2], [1], [1], [0, 0, 0, 1, 1, 1], [0], [0]>} : vector<1x8x8xf32>, vector<1x8x8xf32>, vector<1x8x8xf32> -> vector<1x8x8xf32>
    "tpu.trace_stop"() : () -> ()
    %cst_28 = arith.constant 0.353553385 : f32
    %38 = vector.broadcast %cst_28 : f32 to vector<1x8x8xf32>
    %39 = arith.mulf %37, %38 : vector<1x8x8xf32>
    %cst_29 = arith.constant dense<0xFF800000> : vector<1x8xf32>
    %40 = vector.multi_reduction <maximumf>, %39, %cst_29 [2] : vector<1x8x8xf32> to vector<1x8xf32>
    %41 = vector.shape_cast %40 : vector<1x8xf32> to vector<1x8x1xf32>
    %42 = vector.broadcast %41 : vector<1x8x1xf32> to vector<1x8x8xf32>
    %43 = arith.subf %39, %42 : vector<1x8x8xf32>
    %44 = math.exp %43 : vector<1x8x8xf32>
    %cst_30 = arith.constant dense<0.000000e+00> : vector<1x8xf32>
    %45 = vector.multi_reduction <add>, %44, %cst_30 [2] : vector<1x8x8xf32> to vector<1x8xf32>
    %46 = vector.shape_cast %45 : vector<1x8xf32> to vector<1x8x1xf32>
    %47 = vector.broadcast %46 : vector<1x8x1xf32> to vector<1x8x8xf32>
    %48 = arith.divf %44, %47 : vector<1x8x8xf32>
    %49 = vector.extract_strided_slice %31 {offsets = [0, 0, 0], sizes = [1, 8, 8], strides = [1, 1, 1]} : vector<1x8x32xf32> to vector<1x8x8xf32>
    "tpu.trace_start"() <{level = 10 : i32, message = "bqk,bkd->bqd"}> : () -> ()
    %cst_31 = arith.constant dense<0.000000e+00> : vector<1x8x8xf32>
    %50 = tpu.matmul %48, %49, %cst_31 {dimension_numbers = #tpu.dot_dimension_numbers<[2], [1], [1], [2], [0, 0, 0, 1, 1, 2], [0], [0]>} : vector<1x8x8xf32>, vector<1x8x8xf32>, vector<1x8x8xf32> -> vector<1x8x8xf32>
    "tpu.trace_stop"() : () -> ()
    %51 = vector.shape_cast %50 : vector<1x8x8xf32> to vector<8x8xf32>
    %52 = vector.extract_strided_slice %33 {offsets = [0, 0], sizes = [8, 32], strides = [1, 1]} : vector<32x32xbf16> to vector<8x32xbf16>
    %53 = arith.truncf %51 : vector<8x8xf32> to vector<8x8xbf16>
    %cst_32 = arith.constant dense<0.000000e+00> : vector<8x32xf32>
    %54 = tpu.matmul %53, %52, %cst_32 {dimension_numbers = #tpu.dot_dimension_numbers<[1], [0], [0], [1], [0, 0, 1, 1], [], []>} : vector<8x8xbf16>, vector<8x32xbf16>, vector<8x32xf32> -> vector<8x32xf32>
    %55 = arith.addf %34, %54 : vector<8x32xf32>
    %56 = vector.extract_strided_slice %13 {offsets = [0, 0, 8], sizes = [1, 8, 8], strides = [1, 1, 1]} : vector<1x8x32xf32> to vector<1x8x8xf32>
    %57 = vector.extract_strided_slice %22 {offsets = [0, 0, 8], sizes = [1, 8, 8], strides = [1, 1, 1]} : vector<1x8x32xf32> to vector<1x8x8xf32>
    "tpu.trace_start"() <{level = 10 : i32, message = "bqd,bkd->bqk"}> : () -> ()
    %cst_33 = arith.constant dense<0.000000e+00> : vector<1x8x8xf32>
    %58 = tpu.matmul %56, %57, %cst_33 {dimension_numbers = #tpu.dot_dimension_numbers<[2], [2], [1], [1], [0, 0, 0, 1, 1, 1], [0], [0]>} : vector<1x8x8xf32>, vector<1x8x8xf32>, vector<1x8x8xf32> -> vector<1x8x8xf32>
    "tpu.trace_stop"() : () -> ()
    %cst_34 = arith.constant 0.353553385 : f32
    %59 = vector.broadcast %cst_34 : f32 to vector<1x8x8xf32>
    %60 = arith.mulf %58, %59 : vector<1x8x8xf32>
    %cst_35 = arith.constant dense<0xFF800000> : vector<1x8xf32>
    %61 = vector.multi_reduction <maximumf>, %60, %cst_35 [2] : vector<1x8x8xf32> to vector<1x8xf32>
    %62 = vector.shape_cast %61 : vector<1x8xf32> to vector<1x8x1xf32>
    %63 = vector.broadcast %62 : vector<1x8x1xf32> to vector<1x8x8xf32>
    %64 = arith.subf %60, %63 : vector<1x8x8xf32>
    %65 = math.exp %64 : vector<1x8x8xf32>
    %cst_36 = arith.constant dense<0.000000e+00> : vector<1x8xf32>
    %66 = vector.multi_reduction <add>, %65, %cst_36 [2] : vector<1x8x8xf32> to vector<1x8xf32>
    %67 = vector.shape_cast %66 : vector<1x8xf32> to vector<1x8x1xf32>
    %68 = vector.broadcast %67 : vector<1x8x1xf32> to vector<1x8x8xf32>
    %69 = arith.divf %65, %68 : vector<1x8x8xf32>
    %70 = vector.extract_strided_slice %31 {offsets = [0, 0, 8], sizes = [1, 8, 8], strides = [1, 1, 1]} : vector<1x8x32xf32> to vector<1x8x8xf32>
    "tpu.trace_start"() <{level = 10 : i32, message = "bqk,bkd->bqd"}> : () -> ()
    %cst_37 = arith.constant dense<0.000000e+00> : vector<1x8x8xf32>
    %71 = tpu.matmul %69, %70, %cst_37 {dimension_numbers = #tpu.dot_dimension_numbers<[2], [1], [1], [2], [0, 0, 0, 1, 1, 2], [0], [0]>} : vector<1x8x8xf32>, vector<1x8x8xf32>, vector<1x8x8xf32> -> vector<1x8x8xf32>
    "tpu.trace_stop"() : () -> ()
    %72 = vector.shape_cast %71 : vector<1x8x8xf32> to vector<8x8xf32>
    %73 = vector.extract_strided_slice %33 {offsets = [8, 0], sizes = [8, 32], strides = [1, 1]} : vector<32x32xbf16> to vector<8x32xbf16>
    %74 = arith.truncf %72 : vector<8x8xf32> to vector<8x8xbf16>
    %cst_38 = arith.constant dense<0.000000e+00> : vector<8x32xf32>
    %75 = tpu.matmul %74, %73, %cst_38 {dimension_numbers = #tpu.dot_dimension_numbers<[1], [0], [0], [1], [0, 0, 1, 1], [], []>} : vector<8x8xbf16>, vector<8x32xbf16>, vector<8x32xf32> -> vector<8x32xf32>
    %76 = arith.addf %55, %75 : vector<8x32xf32>
    %77 = vector.extract_strided_slice %13 {offsets = [0, 0, 16], sizes = [1, 8, 8], strides = [1, 1, 1]} : vector<1x8x32xf32> to vector<1x8x8xf32>
    %78 = vector.extract_strided_slice %22 {offsets = [0, 0, 16], sizes = [1, 8, 8], strides = [1, 1, 1]} : vector<1x8x32xf32> to vector<1x8x8xf32>
    "tpu.trace_start"() <{level = 10 : i32, message = "bqd,bkd->bqk"}> : () -> ()
    %cst_39 = arith.constant dense<0.000000e+00> : vector<1x8x8xf32>
    %79 = tpu.matmul %77, %78, %cst_39 {dimension_numbers = #tpu.dot_dimension_numbers<[2], [2], [1], [1], [0, 0, 0, 1, 1, 1], [0], [0]>} : vector<1x8x8xf32>, vector<1x8x8xf32>, vector<1x8x8xf32> -> vector<1x8x8xf32>
    "tpu.trace_stop"() : () -> ()
    %cst_40 = arith.constant 0.353553385 : f32
    %80 = vector.broadcast %cst_40 : f32 to vector<1x8x8xf32>
    %81 = arith.mulf %79, %80 : vector<1x8x8xf32>
    %cst_41 = arith.constant dense<0xFF800000> : vector<1x8xf32>
    %82 = vector.multi_reduction <maximumf>, %81, %cst_41 [2] : vector<1x8x8xf32> to vector<1x8xf32>
    %83 = vector.shape_cast %82 : vector<1x8xf32> to vector<1x8x1xf32>
    %84 = vector.broadcast %83 : vector<1x8x1xf32> to vector<1x8x8xf32>
    %85 = arith.subf %81, %84 : vector<1x8x8xf32>
    %86 = math.exp %85 : vector<1x8x8xf32>
    %cst_42 = arith.constant dense<0.000000e+00> : vector<1x8xf32>
    %87 = vector.multi_reduction <add>, %86, %cst_42 [2] : vector<1x8x8xf32> to vector<1x8xf32>
    %88 = vector.shape_cast %87 : vector<1x8xf32> to vector<1x8x1xf32>
    %89 = vector.broadcast %88 : vector<1x8x1xf32> to vector<1x8x8xf32>
    %90 = arith.divf %86, %89 : vector<1x8x8xf32>
    %91 = vector.extract_strided_slice %31 {offsets = [0, 0, 16], sizes = [1, 8, 8], strides = [1, 1, 1]} : vector<1x8x32xf32> to vector<1x8x8xf32>
    "tpu.trace_start"() <{level = 10 : i32, message = "bqk,bkd->bqd"}> : () -> ()
    %cst_43 = arith.constant dense<0.000000e+00> : vector<1x8x8xf32>
    %92 = tpu.matmul %90, %91, %cst_43 {dimension_numbers = #tpu.dot_dimension_numbers<[2], [1], [1], [2], [0, 0, 0, 1, 1, 2], [0], [0]>} : vector<1x8x8xf32>, vector<1x8x8xf32>, vector<1x8x8xf32> -> vector<1x8x8xf32>
    "tpu.trace_stop"() : () -> ()
    %93 = vector.shape_cast %92 : vector<1x8x8xf32> to vector<8x8xf32>
    %94 = vector.extract_strided_slice %33 {offsets = [16, 0], sizes = [8, 32], strides = [1, 1]} : vector<32x32xbf16> to vector<8x32xbf16>
    %95 = arith.truncf %93 : vector<8x8xf32> to vector<8x8xbf16>
    %cst_44 = arith.constant dense<0.000000e+00> : vector<8x32xf32>
    %96 = tpu.matmul %95, %94, %cst_44 {dimension_numbers = #tpu.dot_dimension_numbers<[1], [0], [0], [1], [0, 0, 1, 1], [], []>} : vector<8x8xbf16>, vector<8x32xbf16>, vector<8x32xf32> -> vector<8x32xf32>
    %97 = arith.addf %76, %96 : vector<8x32xf32>
    %98 = vector.extract_strided_slice %13 {offsets = [0, 0, 24], sizes = [1, 8, 8], strides = [1, 1, 1]} : vector<1x8x32xf32> to vector<1x8x8xf32>
    %99 = vector.extract_strided_slice %22 {offsets = [0, 0, 24], sizes = [1, 8, 8], strides = [1, 1, 1]} : vector<1x8x32xf32> to vector<1x8x8xf32>
    "tpu.trace_start"() <{level = 10 : i32, message = "bqd,bkd->bqk"}> : () -> ()
    %cst_45 = arith.constant dense<0.000000e+00> : vector<1x8x8xf32>
    %100 = tpu.matmul %98, %99, %cst_45 {dimension_numbers = #tpu.dot_dimension_numbers<[2], [2], [1], [1], [0, 0, 0, 1, 1, 1], [0], [0]>} : vector<1x8x8xf32>, vector<1x8x8xf32>, vector<1x8x8xf32> -> vector<1x8x8xf32>
    "tpu.trace_stop"() : () -> ()
    %cst_46 = arith.constant 0.353553385 : f32
    %101 = vector.broadcast %cst_46 : f32 to vector<1x8x8xf32>
    %102 = arith.mulf %100, %101 : vector<1x8x8xf32>
    %cst_47 = arith.constant dense<0xFF800000> : vector<1x8xf32>
    %103 = vector.multi_reduction <maximumf>, %102, %cst_47 [2] : vector<1x8x8xf32> to vector<1x8xf32>
    %104 = vector.shape_cast %103 : vector<1x8xf32> to vector<1x8x1xf32>
    %105 = vector.broadcast %104 : vector<1x8x1xf32> to vector<1x8x8xf32>
    %106 = arith.subf %102, %105 : vector<1x8x8xf32>
    %107 = math.exp %106 : vector<1x8x8xf32>
    %cst_48 = arith.constant dense<0.000000e+00> : vector<1x8xf32>
    %108 = vector.multi_reduction <add>, %107, %cst_48 [2] : vector<1x8x8xf32> to vector<1x8xf32>
    %109 = vector.shape_cast %108 : vector<1x8xf32> to vector<1x8x1xf32>
    %110 = vector.broadcast %109 : vector<1x8x1xf32> to vector<1x8x8xf32>
    %111 = arith.divf %107, %110 : vector<1x8x8xf32>
    %112 = vector.extract_strided_slice %31 {offsets = [0, 0, 24], sizes = [1, 8, 8], strides = [1, 1, 1]} : vector<1x8x32xf32> to vector<1x8x8xf32>
    "tpu.trace_start"() <{level = 10 : i32, message = "bqk,bkd->bqd"}> : () -> ()
    %cst_49 = arith.constant dense<0.000000e+00> : vector<1x8x8xf32>
    %113 = tpu.matmul %111, %112, %cst_49 {dimension_numbers = #tpu.dot_dimension_numbers<[2], [1], [1], [2], [0, 0, 0, 1, 1, 2], [0], [0]>} : vector<1x8x8xf32>, vector<1x8x8xf32>, vector<1x8x8xf32> -> vector<1x8x8xf32>
    "tpu.trace_stop"() : () -> ()
    %114 = vector.shape_cast %113 : vector<1x8x8xf32> to vector<8x8xf32>
    %115 = vector.extract_strided_slice %33 {offsets = [24, 0], sizes = [8, 32], strides = [1, 1]} : vector<32x32xbf16> to vector<8x32xbf16>
    %116 = arith.truncf %114 : vector<8x8xf32> to vector<8x8xbf16>
    %cst_50 = arith.constant dense<0.000000e+00> : vector<8x32xf32>
    %117 = tpu.matmul %116, %115, %cst_50 {dimension_numbers = #tpu.dot_dimension_numbers<[1], [0], [0], [1], [0, 0, 1, 1], [], []>} : vector<8x8xbf16>, vector<8x32xbf16>, vector<8x32xf32> -> vector<8x32xf32>
    %118 = arith.addf %97, %117 : vector<8x32xf32>
    %c0_51 = arith.constant 0 : index
    %c0_52 = arith.constant 0 : index
    %c0_53 = arith.constant 0 : index
    %119 = vector.load %arg15[%c0_51, %c0_52, %c0_53] : memref<1x1x32xf32, #tpu.memory_space<vmem>>, vector<1x1x32xf32>
    %120 = vector.shape_cast %119 : vector<1x1x32xf32> to vector<1x32xf32>
    %121 = vector.broadcast %120 : vector<1x32xf32> to vector<8x32xf32>
    %122 = arith.addf %118, %121 : vector<8x32xf32>
    %123 = arith.addf %4, %122 : vector<8x32xf32>
    %c0_54 = arith.constant 0 : index
    %c0_55 = arith.constant 0 : index
    %c0_56 = arith.constant 0 : index
    %124 = vector.load %arg16[%c0_54, %c0_55, %c0_56] : memref<1x1x32xf32, #tpu.memory_space<vmem>>, vector<1x1x32xf32>
    %125 = vector.shape_cast %124 : vector<1x1x32xf32> to vector<1x32xf32>
    %c0_57 = arith.constant 0 : index
    %c0_58 = arith.constant 0 : index
    %c0_59 = arith.constant 0 : index
    %126 = vector.load %arg17[%c0_57, %c0_58, %c0_59] : memref<1x1x32xf32, #tpu.memory_space<vmem>>, vector<1x1x32xf32>
    %127 = vector.shape_cast %126 : vector<1x1x32xf32> to vector<1x32xf32>
    %cst_60 = arith.constant dense<0.000000e+00> : vector<8xf32>
    %128 = vector.multi_reduction <add>, %123, %cst_60 [1] : vector<8x32xf32> to vector<8xf32>
    %129 = vector.shape_cast %128 : vector<8xf32> to vector<8x1xf32>
    %cst_61 = arith.constant 3.200000e+01 : f32
    %130 = vector.broadcast %cst_61 : f32 to vector<8x1xf32>
    %131 = arith.divf %129, %130 : vector<8x1xf32>
    %132 = vector.broadcast %131 : vector<8x1xf32> to vector<8x32xf32>
    %133 = arith.subf %123, %132 : vector<8x32xf32>
    %134 = arith.mulf %133, %133 : vector<8x32xf32>
    %cst_62 = arith.constant dense<0.000000e+00> : vector<8xf32>
    %135 = vector.multi_reduction <add>, %134, %cst_62 [1] : vector<8x32xf32> to vector<8xf32>
    %136 = vector.shape_cast %135 : vector<8xf32> to vector<8x1xf32>
    %cst_63 = arith.constant 3.200000e+01 : f32
    %137 = vector.broadcast %cst_63 : f32 to vector<8x1xf32>
    %138 = arith.divf %136, %137 : vector<8x1xf32>
    %139 = vector.broadcast %131 : vector<8x1xf32> to vector<8x32xf32>
    %140 = arith.subf %123, %139 : vector<8x32xf32>
    %cst_64 = arith.constant 9.99999974E-6 : f32
    %141 = vector.broadcast %cst_64 : f32 to vector<8x1xf32>
    %142 = arith.addf %138, %141 : vector<8x1xf32>
    %143 = math.rsqrt %142 : vector<8x1xf32>
    %144 = vector.broadcast %143 : vector<8x1xf32> to vector<8x32xf32>
    %145 = arith.mulf %140, %144 : vector<8x32xf32>
    %146 = vector.broadcast %125 : vector<1x32xf32> to vector<8x32xf32>
    %147 = arith.mulf %145, %146 : vector<8x32xf32>
    %148 = vector.broadcast %127 : vector<1x32xf32> to vector<8x32xf32>
    %149 = arith.addf %147, %148 : vector<8x32xf32>
    %c0_65 = arith.constant 0 : index
    %c0_66 = arith.constant 0 : index
    %c0_67 = arith.constant 0 : index
    %150 = vector.load %arg18[%c0_65, %c0_66, %c0_67] : memref<1x32x128xbf16, #tpu.memory_space<vmem>>, vector<1x32x128xbf16>
    %151 = vector.shape_cast %150 : vector<1x32x128xbf16> to vector<32x128xbf16>
    %152 = arith.truncf %149 : vector<8x32xf32> to vector<8x32xbf16>
    %cst_68 = arith.constant dense<0.000000e+00> : vector<8x128xf32>
    %153 = tpu.matmul %152, %151, %cst_68 {dimension_numbers = #tpu.dot_dimension_numbers<[1], [0], [0], [1], [0, 0, 1, 1], [], []>} : vector<8x32xbf16>, vector<32x128xbf16>, vector<8x128xf32> -> vector<8x128xf32>
    %c0_69 = arith.constant 0 : index
    %c0_70 = arith.constant 0 : index
    %c0_71 = arith.constant 0 : index
    %154 = vector.load %arg19[%c0_69, %c0_70, %c0_71] : memref<1x1x128xf32, #tpu.memory_space<vmem>>, vector<1x1x128xf32>
    %155 = vector.shape_cast %154 : vector<1x1x128xf32> to vector<1x128xf32>
    %156 = vector.broadcast %155 : vector<1x128xf32> to vector<8x128xf32>
    %157 = arith.addf %153, %156 : vector<8x128xf32>
    %cst_72 = arith.constant 5.000000e-01 : f32
    %158 = vector.broadcast %cst_72 : f32 to vector<8x128xf32>
    %159 = arith.mulf %158, %157 : vector<8x128xf32>
    %cst_73 = arith.constant 4.471500e-02 : f32
    %160 = vector.broadcast %cst_73 : f32 to vector<8x128xf32>
    %161 = arith.mulf %160, %157 : vector<8x128xf32>
    %162 = arith.mulf %161, %157 : vector<8x128xf32>
    %163 = arith.mulf %162, %157 : vector<8x128xf32>
    %164 = arith.addf %157, %163 : vector<8x128xf32>
    %cst_74 = arith.constant 0.797884583 : f32
    %165 = vector.broadcast %cst_74 : f32 to vector<8x128xf32>
    %166 = arith.mulf %165, %164 : vector<8x128xf32>
    %167 = math.tanh %166 : vector<8x128xf32>
    %cst_75 = arith.constant 1.000000e+00 : f32
    %168 = vector.broadcast %cst_75 : f32 to vector<8x128xf32>
    %169 = arith.addf %168, %167 : vector<8x128xf32>
    %170 = arith.mulf %159, %169 : vector<8x128xf32>
    %c0_76 = arith.constant 0 : index
    %c0_77 = arith.constant 0 : index
    %c0_78 = arith.constant 0 : index
    %171 = vector.load %arg20[%c0_76, %c0_77, %c0_78] : memref<1x128x32xbf16, #tpu.memory_space<vmem>>, vector<1x128x32xbf16>
    %172 = vector.shape_cast %171 : vector<1x128x32xbf16> to vector<128x32xbf16>
    %173 = arith.truncf %170 : vector<8x128xf32> to vector<8x128xbf16>
    %cst_79 = arith.constant dense<0.000000e+00> : vector<8x32xf32>
    %174 = tpu.matmul %173, %172, %cst_79 {dimension_numbers = #tpu.dot_dimension_numbers<[1], [0], [0], [1], [0, 0, 1, 1], [], []>} : vector<8x128xbf16>, vector<128x32xbf16>, vector<8x32xf32> -> vector<8x32xf32>
    %c0_80 = arith.constant 0 : index
    %c0_81 = arith.constant 0 : index
    %c0_82 = arith.constant 0 : index
    %175 = vector.load %arg21[%c0_80, %c0_81, %c0_82] : memref<1x1x32xf32, #tpu.memory_space<vmem>>, vector<1x1x32xf32>
    %176 = vector.shape_cast %175 : vector<1x1x32xf32> to vector<1x32xf32>
    %177 = vector.broadcast %176 : vector<1x32xf32> to vector<8x32xf32>
    %178 = arith.addf %174, %177 : vector<8x32xf32>
    %179 = arith.addf %149, %178 : vector<8x32xf32>
    %c0_83 = arith.constant 0 : index
    %c0_84 = arith.constant 0 : index
    %c0_85 = arith.constant 0 : index
    %180 = vector.load %arg22[%c0_83, %c0_84, %c0_85] : memref<1x1x32xf32, #tpu.memory_space<vmem>>, vector<1x1x32xf32>
    %181 = vector.shape_cast %180 : vector<1x1x32xf32> to vector<1x32xf32>
    %c0_86 = arith.constant 0 : index
    %c0_87 = arith.constant 0 : index
    %c0_88 = arith.constant 0 : index
    %182 = vector.load %arg23[%c0_86, %c0_87, %c0_88] : memref<1x1x32xf32, #tpu.memory_space<vmem>>, vector<1x1x32xf32>
    %183 = vector.shape_cast %182 : vector<1x1x32xf32> to vector<1x32xf32>
    %cst_89 = arith.constant dense<0.000000e+00> : vector<8xf32>
    %184 = vector.multi_reduction <add>, %179, %cst_89 [1] : vector<8x32xf32> to vector<8xf32>
    %185 = vector.shape_cast %184 : vector<8xf32> to vector<8x1xf32>
    %cst_90 = arith.constant 3.200000e+01 : f32
    %186 = vector.broadcast %cst_90 : f32 to vector<8x1xf32>
    %187 = arith.divf %185, %186 : vector<8x1xf32>
    %188 = vector.broadcast %187 : vector<8x1xf32> to vector<8x32xf32>
    %189 = arith.subf %179, %188 : vector<8x32xf32>
    %190 = arith.mulf %189, %189 : vector<8x32xf32>
    %cst_91 = arith.constant dense<0.000000e+00> : vector<8xf32>
    %191 = vector.multi_reduction <add>, %190, %cst_91 [1] : vector<8x32xf32> to vector<8xf32>
    %192 = vector.shape_cast %191 : vector<8xf32> to vector<8x1xf32>
    %cst_92 = arith.constant 3.200000e+01 : f32
    %193 = vector.broadcast %cst_92 : f32 to vector<8x1xf32>
    %194 = arith.divf %192, %193 : vector<8x1xf32>
    %195 = vector.broadcast %187 : vector<8x1xf32> to vector<8x32xf32>
    %196 = arith.subf %179, %195 : vector<8x32xf32>
    %cst_93 = arith.constant 9.99999974E-6 : f32
    %197 = vector.broadcast %cst_93 : f32 to vector<8x1xf32>
    %198 = arith.addf %194, %197 : vector<8x1xf32>
    %199 = math.rsqrt %198 : vector<8x1xf32>
    %200 = vector.broadcast %199 : vector<8x1xf32> to vector<8x32xf32>
    %201 = arith.mulf %196, %200 : vector<8x32xf32>
    %202 = vector.broadcast %181 : vector<1x32xf32> to vector<8x32xf32>
    %203 = arith.mulf %201, %202 : vector<8x32xf32>
    %204 = vector.broadcast %183 : vector<1x32xf32> to vector<8x32xf32>
    %205 = arith.addf %203, %204 : vector<8x32xf32>
    %206 = vector.shape_cast %205 : vector<8x32xf32> to vector<1x8x32xf32>
    %c0_94 = arith.constant 0 : index
    %c0_95 = arith.constant 0 : index
    %c0_96 = arith.constant 0 : index
    %207 = vector.load %arg31[%c0_94, %c0_95, %c0_96] : memref<1x8x32xf32, #tpu.memory_space<vmem>>, vector<1x8x32xf32>
    tpu.vector_store %arg31[%c0_94, %c0_95, %c0_96], %206 {strides = array<i32>} : memref<1x8x32xf32, #tpu.memory_space<vmem>>, vector<1x8x32xf32>,
    %c1_i32 = arith.constant 1 : i32
    %208 = arith.cmpi eq, %arg1, %c1_i32 : i32
    %209 = arith.extui %208 : i1 to i32
    %c0_i32_97 = arith.constant 0 : i32
    %210 = arith.cmpi ne, %209, %c0_i32_97 : i32
    scf.if %210 {
      %c0_98 = arith.constant 0 : index
      %c0_99 = arith.constant 0 : index
      %211 = vector.load %arg24[%c0_98, %c0_99] : memref<1x32xf32, #tpu.memory_space<vmem>>, vector<1x32xf32>
      %c0_100 = arith.constant 0 : index
      %c0_101 = arith.constant 0 : index
      %212 = vector.load %arg25[%c0_100, %c0_101] : memref<1x32xf32, #tpu.memory_space<vmem>>, vector<1x32xf32>
      %cst_102 = arith.constant dense<0.000000e+00> : vector<8xf32>
      %213 = vector.multi_reduction <add>, %205, %cst_102 [1] : vector<8x32xf32> to vector<8xf32>
      %214 = vector.shape_cast %213 : vector<8xf32> to vector<8x1xf32>
      %cst_103 = arith.constant 3.200000e+01 : f32
      %215 = vector.broadcast %cst_103 : f32 to vector<8x1xf32>
      %216 = arith.divf %214, %215 : vector<8x1xf32>
      %217 = vector.broadcast %216 : vector<8x1xf32> to vector<8x32xf32>
      %218 = arith.subf %205, %217 : vector<8x32xf32>
      %219 = arith.mulf %218, %218 : vector<8x32xf32>
      %cst_104 = arith.constant dense<0.000000e+00> : vector<8xf32>
      %220 = vector.multi_reduction <add>, %219, %cst_104 [1] : vector<8x32xf32> to vector<8xf32>
      %221 = vector.shape_cast %220 : vector<8xf32> to vector<8x1xf32>
      %cst_105 = arith.constant 3.200000e+01 : f32
      %222 = vector.broadcast %cst_105 : f32 to vector<8x1xf32>
      %223 = arith.divf %221, %222 : vector<8x1xf32>
      %224 = vector.broadcast %216 : vector<8x1xf32> to vector<8x32xf32>
      %225 = arith.subf %205, %224 : vector<8x32xf32>
      %cst_106 = arith.constant 9.99999974E-6 : f32
      %226 = vector.broadcast %cst_106 : f32 to vector<8x1xf32>
      %227 = arith.addf %223, %226 : vector<8x1xf32>
      %228 = math.rsqrt %227 : vector<8x1xf32>
      %229 = vector.broadcast %228 : vector<8x1xf32> to vector<8x32xf32>
      %230 = arith.mulf %225, %229 : vector<8x32xf32>
      %231 = vector.broadcast %211 : vector<1x32xf32> to vector<8x32xf32>
      %232 = arith.mulf %230, %231 : vector<8x32xf32>
      %233 = vector.broadcast %212 : vector<1x32xf32> to vector<8x32xf32>
      %234 = arith.addf %232, %233 : vector<8x32xf32>
      %c0_107 = arith.constant 0 : index
      %c0_108 = arith.constant 0 : index
      %235 = vector.load %arg26[%c0_107, %c0_108] : memref<32x16xbf16, #tpu.memory_space<vmem>>, vector<32x16xbf16>
      %236 = arith.truncf %234 : vector<8x32xf32> to vector<8x32xbf16>
      %cst_109 = arith.constant dense<0.000000e+00> : vector<8x16xf32>
      %237 = tpu.matmul %236, %235, %cst_109 {dimension_numbers = #tpu.dot_dimension_numbers<[1], [0], [0], [1], [0, 0, 1, 1], [], []>} : vector<8x32xbf16>, vector<32x16xbf16>, vector<8x16xf32> -> vector<8x16xf32>
      %c0_110 = arith.constant 0 : index
      %c0_111 = arith.constant 0 : index
      %238 = vector.load %arg27[%c0_110, %c0_111] : memref<1x16xf32, #tpu.memory_space<vmem>>, vector<1x16xf32>
      %239 = vector.broadcast %238 : vector<1x16xf32> to vector<8x16xf32>
      %240 = arith.addf %237, %239 : vector<8x16xf32>
      %241 = math.tanh %240 : vector<8x16xf32>
      %c0_112 = arith.constant 0 : index
      %c0_113 = arith.constant 0 : index
      %242 = vector.load %arg28[%c0_112, %c0_113] : memref<16x1xf32, #tpu.memory_space<vmem>>, vector<16x1xf32>
      %cst_114 = arith.constant dense<0.000000e+00> : vector<8x1xf32>
      %243 = tpu.matmul %241, %242, %cst_114 {dimension_numbers = #tpu.dot_dimension_numbers<[1], [0], [0], [1], [0, 0, 1, 1], [], []>} : vector<8x16xf32>, vector<16x1xf32>, vector<8x1xf32> -> vector<8x1xf32>
      %c0_115 = arith.constant 0 : index
      %c0_116 = arith.constant 0 : index
      %244 = vector.load %arg29[%c0_115, %c0_116] : memref<1x1xf32, #tpu.memory_space<vmem>>, vector<1x1xf32>
      %245 = vector.broadcast %244 : vector<1x1xf32> to vector<8x1xf32>
      %246 = arith.addf %243, %245 : vector<8x1xf32>
      %247 = vector.shape_cast %246 : vector<8x1xf32> to vector<1x8x1xf32>
      %cst_117 = arith.constant dense<0xFF800000> : vector<1x1xf32>
      %248 = vector.multi_reduction <maximumf>, %247, %cst_117 [1] : vector<1x8x1xf32> to vector<1x1xf32>
      %249 = vector.shape_cast %248 : vector<1x1xf32> to vector<1x1x1xf32>
      %250 = vector.broadcast %249 : vector<1x1x1xf32> to vector<1x8x1xf32>
      %251 = arith.subf %247, %250 : vector<1x8x1xf32>
      %252 = math.exp %251 : vector<1x8x1xf32>
      %cst_118 = arith.constant dense<0.000000e+00> : vector<1x1xf32>
      %253 = vector.multi_reduction <add>, %252, %cst_118 [1] : vector<1x8x1xf32> to vector<1x1xf32>
      %254 = vector.shape_cast %253 : vector<1x1xf32> to vector<1x1x1xf32>
      %255 = vector.broadcast %254 : vector<1x1x1xf32> to vector<1x8x1xf32>
      %256 = arith.divf %252, %255 : vector<1x8x1xf32>
      %257 = vector.shape_cast %234 : vector<8x32xf32> to vector<1x8x32xf32>
      %258 = vector.broadcast %256 : vector<1x8x1xf32> to vector<1x8x32xf32>
      %259 = arith.mulf %258, %257 : vector<1x8x32xf32>
      %cst_119 = arith.constant dense<0.000000e+00> : vector<1x32xf32>
      %260 = vector.multi_reduction <add>, %259, %cst_119 [1] : vector<1x8x32xf32> to vector<1x32xf32>
      %261 = vector.shape_cast %260 : vector<1x32xf32> to vector<1x1x32xf32>
      %c0_120 = arith.constant 0 : index
      %c0_121 = arith.constant 0 : index
      %c0_122 = arith.constant 0 : index
      %262 = vector.load %arg30[%c0_120, %c0_121, %c0_122] : memref<1x1x32xf32, #tpu.memory_space<vmem>>, vector<1x1x32xf32>
      tpu.vector_store %arg30[%c0_120, %c0_121, %c0_122], %261 {strides = array<i32>} : memref<1x1x32xf32, #tpu.memory_space<vmem>>, vector<1x1x32xf32>,
    } else {
    }
    return
  }
  func.func @transform_0(%arg0: i32, %arg1: i32) -> (i32, i32, i32) {
    %c0_i32 = arith.constant 0 : i32
    %c0_i32_0 = arith.constant 0 : i32
    %c0_i32_1 = arith.constant 0 : i32
    return %arg0, %c0_i32, %c0_i32_0 : i32, i32, i32
  }
  func.func @transform_1(%arg0: i32, %arg1: i32) -> (i32, i32) {
    %c0_i32 = arith.constant 0 : i32
    %c0_i32_0 = arith.constant 0 : i32
    %c0_i32_1 = arith.constant 0 : i32
    return %c0_i32, %c0_i32_0 : i32, i32
  }
  func.func @transform_2(%arg0: i32, %arg1: i32) -> (i32, i32) {
    %c0_i32 = arith.constant 0 : i32
    %c0_i32_0 = arith.constant 0 : i32
    %c0_i32_1 = arith.constant 0 : i32
    return %c0_i32, %c0_i32_0 : i32, i32
  }
  func.func @transform_3(%arg0: i32, %arg1: i32) -> (i32, i32) {
    %c0_i32 = arith.constant 0 : i32
    %c0_i32_0 = arith.constant 0 : i32
    %c0_i32_1 = arith.constant 0 : i32
    return %c0_i32, %c0_i32_0 : i32, i32
  }
  func.func @transform_4(%arg0: i32, %arg1: i32) -> (i32, i32) {
    %c0_i32 = arith.constant 0 : i32
    %c0_i32_0 = arith.constant 0 : i32
    %c0_i32_1 = arith.constant 0 : i32
    return %c0_i32, %c0_i32_0 : i32, i32
  }
  func.func @transform_5(%arg0: i32, %arg1: i32) -> (i32, i32) {
    %c0_i32 = arith.constant 0 : i32
    %c0_i32_0 = arith.constant 0 : i32
    %c0_i32_1 = arith.constant 0 : i32
    return %c0_i32, %c0_i32_0 : i32, i32
  }
  func.func @transform_6(%arg0: i32, %arg1: i32) -> (i32, i32, i32) {
    %c0_i32 = arith.constant 0 : i32
    %c0_i32_0 = arith.constant 0 : i32
    %c0_i32_1 = arith.constant 0 : i32
    return %arg1, %c0_i32, %c0_i32_0 : i32, i32, i32
  }
  func.func @transform_7(%arg0: i32, %arg1: i32) -> (i32, i32, i32) {
    %c0_i32 = arith.constant 0 : i32
    %c0_i32_0 = arith.constant 0 : i32
    %c0_i32_1 = arith.constant 0 : i32
    return %arg1, %c0_i32, %c0_i32_0 : i32, i32, i32
  }
  func.func @transform_8(%arg0: i32, %arg1: i32) -> (i32, i32, i32) {
    %c0_i32 = arith.constant 0 : i32
    %c0_i32_0 = arith.constant 0 : i32
    %c0_i32_1 = arith.constant 0 : i32
    return %arg1, %c0_i32, %c0_i32_0 : i32, i32, i32
  }
  func.func @transform_9(%arg0: i32, %arg1: i32) -> (i32, i32, i32) {
    %c0_i32 = arith.constant 0 : i32
    %c0_i32_0 = arith.constant 0 : i32
    %c0_i32_1 = arith.constant 0 : i32
    return %arg1, %c0_i32, %c0_i32_0 : i32, i32, i32
  }
  func.func @transform_10(%arg0: i32, %arg1: i32) -> (i32, i32, i32) {
    %c0_i32 = arith.constant 0 : i32
    %c0_i32_0 = arith.constant 0 : i32
    %c0_i32_1 = arith.constant 0 : i32
    return %arg1, %c0_i32, %c0_i32_0 : i32, i32, i32
  }
  func.func @transform_11(%arg0: i32, %arg1: i32) -> (i32, i32, i32) {
    %c0_i32 = arith.constant 0 : i32
    %c0_i32_0 = arith.constant 0 : i32
    %c0_i32_1 = arith.constant 0 : i32
    return %arg1, %c0_i32, %c0_i32_0 : i32, i32, i32
  }
  func.func @transform_12(%arg0: i32, %arg1: i32) -> (i32, i32, i32) {
    %c0_i32 = arith.constant 0 : i32
    %c0_i32_0 = arith.constant 0 : i32
    %c0_i32_1 = arith.constant 0 : i32
    return %arg1, %c0_i32, %c0_i32_0 : i32, i32, i32
  }
  func.func @transform_13(%arg0: i32, %arg1: i32) -> (i32, i32, i32) {
    %c0_i32 = arith.constant 0 : i32
    %c0_i32_0 = arith.constant 0 : i32
    %c0_i32_1 = arith.constant 0 : i32
    return %arg1, %c0_i32, %c0_i32_0 : i32, i32, i32
  }
  func.func @transform_14(%arg0: i32, %arg1: i32) -> (i32, i32, i32) {
    %c0_i32 = arith.constant 0 : i32
    %c0_i32_0 = arith.constant 0 : i32
    %c0_i32_1 = arith.constant 0 : i32
    return %arg1, %c0_i32, %c0_i32_0 : i32, i32, i32
  }
  func.func @transform_15(%arg0: i32, %arg1: i32) -> (i32, i32, i32) {
    %c0_i32 = arith.constant 0 : i32
    %c0_i32_0 = arith.constant 0 : i32
    %c0_i32_1 = arith.constant 0 : i32
    return %arg1, %c0_i32, %c0_i32_0 : i32, i32, i32
  }
  func.func @transform_16(%arg0: i32, %arg1: i32) -> (i32, i32, i32) {
    %c0_i32 = arith.constant 0 : i32
    %c0_i32_0 = arith.constant 0 : i32
    %c0_i32_1 = arith.constant 0 : i32
    return %arg1, %c0_i32, %c0_i32_0 : i32, i32, i32
  }
  func.func @transform_17(%arg0: i32, %arg1: i32) -> (i32, i32, i32) {
    %c0_i32 = arith.constant 0 : i32
    %c0_i32_0 = arith.constant 0 : i32
    %c0_i32_1 = arith.constant 0 : i32
    return %arg1, %c0_i32, %c0_i32_0 : i32, i32, i32
  }
  func.func @transform_18(%arg0: i32, %arg1: i32) -> (i32, i32, i32) {
    %c0_i32 = arith.constant 0 : i32
    %c0_i32_0 = arith.constant 0 : i32
    %c0_i32_1 = arith.constant 0 : i32
    return %arg1, %c0_i32, %c0_i32_0 : i32, i32, i32
  }
  func.func @transform_19(%arg0: i32, %arg1: i32) -> (i32, i32, i32) {
    %c0_i32 = arith.constant 0 : i32
    %c0_i32_0 = arith.constant 0 : i32
    %c0_i32_1 = arith.constant 0 : i32
    return %arg1, %c0_i32, %c0_i32_0 : i32, i32, i32
  }
  func.func @transform_20(%arg0: i32, %arg1: i32) -> (i32, i32, i32) {
    %c0_i32 = arith.constant 0 : i32
    %c0_i32_0 = arith.constant 0 : i32
    %c0_i32_1 = arith.constant 0 : i32
    return %arg1, %c0_i32, %c0_i32_0 : i32, i32, i32
  }
  func.func @transform_21(%arg0: i32, %arg1: i32) -> (i32, i32, i32) {
    %c0_i32 = arith.constant 0 : i32
    %c0_i32_0 = arith.constant 0 : i32
    %c0_i32_1 = arith.constant 0 : i32
    return %arg1, %c0_i32, %c0_i32_0 : i32, i32, i32
  }
  func.func @transform_22(%arg0: i32, %arg1: i32) -> (i32, i32) {
    %c0_i32 = arith.constant 0 : i32
    %c0_i32_0 = arith.constant 0 : i32
    %c0_i32_1 = arith.constant 0 : i32
    return %c0_i32, %c0_i32_0 : i32, i32
  }
  func.func @transform_23(%arg0: i32, %arg1: i32) -> (i32, i32) {
    %c0_i32 = arith.constant 0 : i32
    %c0_i32_0 = arith.constant 0 : i32
    %c0_i32_1 = arith.constant 0 : i32
    return %c0_i32, %c0_i32_0 : i32, i32
  }
  func.func @transform_24(%arg0: i32, %arg1: i32) -> (i32, i32) {
    %c0_i32 = arith.constant 0 : i32
    %c0_i32_0 = arith.constant 0 : i32
    %c0_i32_1 = arith.constant 0 : i32
    return %c0_i32, %c0_i32_0 : i32, i32
  }
  func.func @transform_25(%arg0: i32, %arg1: i32) -> (i32, i32) {
    %c0_i32 = arith.constant 0 : i32
    %c0_i32_0 = arith.constant 0 : i32
    %c0_i32_1 = arith.constant 0 : i32
    return %c0_i32, %c0_i32_0 : i32, i32
  }
  func.func @transform_26(%arg0: i32, %arg1: i32) -> (i32, i32) {
    %c0_i32 = arith.constant 0 : i32
    %c0_i32_0 = arith.constant 0 : i32
    %c0_i32_1 = arith.constant 0 : i32
    return %c0_i32, %c0_i32_0 : i32, i32
  }
  func.func @transform_27(%arg0: i32, %arg1: i32) -> (i32, i32) {
    %c0_i32 = arith.constant 0 : i32
    %c0_i32_0 = arith.constant 0 : i32
    %c0_i32_1 = arith.constant 0 : i32
    return %c0_i32, %c0_i32_0 : i32, i32
  }
  func.func @transform_28(%arg0: i32, %arg1: i32) -> (i32, i32, i32) {
    %c0_i32 = arith.constant 0 : i32
    %c0_i32_0 = arith.constant 0 : i32
    %c0_i32_1 = arith.constant 0 : i32
    return %arg0, %c0_i32, %c0_i32_0 : i32, i32, i32
  }
}

</mosaic_0001>

<bundles_post_ra>
// kernel: tpu_custom_call.1
= control target key start
LH: loop header
LB: loop body
LE: loop exit
PB: predicated region body
PF: predicated region fallthrough
CT: control target
= control target key end

     0   :  { %s4797_s0 = inlined_call_operand.vmem [shape: f32[2,8,16], index: 0, kind: input, shape index: {}]   ;;  %s4798_s1 = inlined_call_operand.vmem [shape: bf16[16,32], index: 1, kind: input, shape index: {}]   ;;  %s4799_s2 = inlined_call_operand.hbm [shape: f32[1,32], index: 2, kind: input, shape index: {}]   ;;  %s4800_s3 = inlined_call_operand.hbm [shape: f32[1,32], index: 3, kind: input, shape index: {}]   ;;  %s4801_s4 = inlined_call_operand.hbm [shape: f32[1,32], index: 4, kind: input, shape index: {}]   ;;  %s4802_s5 = inlined_call_operand.hbm [shape: f32[8,32], index: 5, kind: input, shape index: {}]   ;;  %s4803_s6 = inlined_call_operand.vmem [shape: bf16[2,32,32], index: 6, kind: input, shape index: {}]   ;;  %s4804_s7 = inlined_call_operand.hbm [shape: f32[2,1,32], index: 7, kind: input, shape index: {}]   ;;  %s4805_s8 = inlined_call_operand.vmem [shape: bf16[2,32,32], index: 8, kind: input, shape index: {}]   ;;  %s4806_s9 = inlined_call_operand.hbm [shape: f32[2,1,32], index: 9, kind: input, shape index: {}]   ;;  %s4807_s10 = inlined_call_operand.vmem [shape: bf16[2,32,32], index: 10, kind: input, shape index: {}]   ;;  %s4808_s11 = inlined_call_operand.hbm [shape: f32[2,1,32], index: 11, kind: input, shape index: {}]   ;;  %s4809_s12 = inlined_call_operand.vmem [shape: bf16[2,32,32], index: 12, kind: input, shape index: {}]   ;;  %s4810_s13 = inlined_call_operand.vmem [shape: f32[2,1,32], index: 13, kind: input, shape index: {}]   ;;  %s4811_s14 = inlined_call_operand.hbm [shape: f32[2,1,32], index: 14, kind: input, shape index: {}]   ;;  %s4812_s15 = inlined_call_operand.vmem [shape: f32[2,1,32], index: 15, kind: input, shape index: {}]   ;;  %s4813_s16 = inlined_call_operand.vmem [shape: bf16[2,32,128], index: 16, kind: input, shape index: {}]   ;;  %s4814_s17 = inlined_call_operand.vmem [shape: f32[2,1,128], index: 17, kind: input, shape index: {}]   ;;  %s4815_s18 = inlined_call_operand.vmem [shape: bf16[2,128,32], index: 18, kind: input, shape index: {}]   ;;  %s4816_s19 = inlined_call_operand.vmem [shape: f32[2,1,32], index: 19, kind: input, shape index: {}]   ;;  %s4817_s20 = inlined_call_operand.vmem [shape: f32[2,1,32], index: 20, kind: input, shape index: {}]   ;;  %s4818_s21 = inlined_call_operand.vmem [shape: f32[2,1,32], index: 21, kind: input, shape index: {}]   ;;  %s4819_s22 = inlined_call_operand.vmem [shape: f32[1,32], index: 22, kind: input, shape index: {}]   ;;  %s4820_s23 = inlined_call_operand.vmem [shape: f32[1,32], index: 23, kind: input, shape index: {}]   ;;  %s4821_s24 = inlined_call_operand.vmem [shape: bf16[32,16], index: 24, kind: input, shape index: {}]   ;;  %s4822_s25 = inlined_call_operand.vmem [shape: f32[1,16], index: 25, kind: input, shape index: {}]   ;;  %s4823_s26 = inlined_call_operand.vmem [shape: f32[16,1], index: 26, kind: input, shape index: {}]   ;;  %s4824_s27 = inlined_call_operand.<no memory space> [shape: f32[1,1], index: 27, kind: input, shape index: {}]   ;;  %s4825_s28 = inlined_call_operand.hbm [shape: f32[2,1,32], index: 28, kind: output, shape index: {}]  }
   0x1   :  { %4852 = sst [smem:[#allocation37_spill]] %s4797_s0  ;;  %v33_v0 = vstv %s4824_s27 }
   0x2   :  { %4853 = sst [smem:[#allocation38_spill]] %s4798_s1  ;;  %34 = vst [vmem:[#allocation3] sm:$0x1] %v33_v0 }
   0x3   :  { %4854 = sst [smem:[#allocation39_spill]] %s4799_s2 }
   0x4   :  { %4855 = sst [smem:[#allocation40_spill]] %s4800_s3 }
   0x5   :  { %4856 = sst [smem:[#allocation41_spill]] %s4801_s4 }
   0x6   :  { %4857 = sst [smem:[#allocation42_spill]] %s4802_s5 }
   0x7   :  { %4858 = sst [smem:[#allocation43_spill]] %s4803_s6 }
   0x8   :  { %4859 = sst [smem:[#allocation44_spill]] %s4804_s7 }
   0x9   :  { %4860 = sst [smem:[#allocation45_spill]] %s4805_s8 }
   0xa   :  { %4861 = sst [smem:[#allocation46_spill]] %s4806_s9 }
   0xb   :  { %4862 = sst [smem:[#allocation47_spill]] %s4807_s10 }
   0xc   :  { %4863 = sst [smem:[#allocation48_spill]] %s4808_s11 }
   0xd   :  { %4864 = sst [smem:[#allocation49_spill]] %s4809_s12 }
   0xe   :  { %4865 = sst [smem:[#allocation50_spill]] %s4810_s13 }
   0xf   :  { %4866 = sst [smem:[#allocation51_spill]] %s4811_s14 }
  0x10   :  { %4867 = sst [smem:[#allocation52_spill]] %s4812_s15 }
  0x11   :  { %4868 = sst [smem:[#allocation53_spill]] %s4813_s16 }
  0x12   :  { %4869 = sst [smem:[#allocation54_spill]] %s4814_s17 }
  0x13   :  { %4870 = sst [smem:[#allocation55_spill]] %s4815_s18 }
  0x14   :  { %4871 = sst [smem:[#allocation56_spill]] %s4816_s19 }
  0x15   :  { %4872 = sst [smem:[#allocation57_spill]] %s4817_s20 }
  0x16   :  { %4873 = sst [smem:[#allocation58_spill]] %s4818_s21 }
  0x17   :  { %4874 = sst [smem:[#allocation59_spill]] %s4819_s22 }
  0x18   :  { %4875 = sst [smem:[#allocation60_spill]] %s4820_s23 }
  0x19   :  { %4876 = sst [smem:[#allocation61_spill]] %s4821_s24 }
  0x1a   :  { %4877 = sst [smem:[#allocation62_spill]] %s4822_s25 }
  0x1b   :  { %4878 = sst [smem:[#allocation63_spill]] %s4823_s26 }
  0x1c   :  { %4879 = sst [smem:[#allocation64_spill]] %s4825_s28 }
  0x1d   :  { %35 = vsyncpa [#allocation5], 0 }
  0x1e   :  { %36 = vsyncpa [#allocation8], 0 }
  0x1f   :  { %37 = vsyncpa [#allocation11], 0 }
  0x20   :  { %38 = vsyncpa [#allocation6], 0 }
  0x21   :  { %40 = vsyncpa [#allocation6 + $0x1], 0  ;;  %s4204_s9 = smov 0   ;;  %s4206_s30 = smov 0  }
  0x22   :  { %s4208_s3 = smov 0   ;;  %s4210_s6 = smov 0  }
  0x23   :  { %s4212_s10 = smov 0   ;;  %s4214_s0 = smov 0  }
  0x24   :  { %s4216_s11 = smov 0   ;;  %s4218_s27 = smov 0  }
  0x25   :  { %s4220_s29 = smov 0   ;;  %s4222_s2 = smov 0  }
  0x26   :  { %s4224_s7 = smov 0  }
  0x27 LB: > { %4880 = sst [smem:[#allocation22_spill]] %s3995_s9  ;;  %s4258_s12 = sadd.s32 4294967295, %s4035_s7   ;;  %s4035_s7 = sphi %s4224_s7, %s46_s7   ;;  %s4031_s2 = sphi %s4222_s2, %s4974_s2   ;;  %s4027_s29 = sphi %s4220_s29, %s4973_s29   ;;  %s4023_s27 = sphi %s4218_s27, %s4972_s27   ;;  %s4019_s11 = sphi %s4216_s11, %s4971_s11   ;;  %s4015_s0 = sphi %s4214_s0, %s4970_s0   ;;  %s4011_s10 = sphi %s4212_s10, %s4977_s10   ;;  %s4007_s6 = sphi %s4210_s6, %s4968_s6   ;;  %s4003_s3 = sphi %s4208_s3, %s4967_s3   ;;  %s3999_s30 = sphi %s4206_s30, %s4976_s30   ;;  %s3995_s9 = sphi %s4204_s9, %s4975_s9  }
  0x28   : > { %4881 = sst [smem:[#allocation23_spill]] %s4003_s3  ;;  %s3177_s1 = sadd.s32 4294967294, %s4035_s7  }
  0x29   : > { %4882 = sst [smem:[#allocation24_spill]] %s4011_s10  ;;  %p235_p0 = scmp.ne.s32.totalorder %s4011_s10, %s4007_s6 }
  0x2a   : > { %4883 = sst [smem:[#allocation25_spill]] %s4015_s0  ;;  %p4839_p1 = scmp.eq.s32.totalorder %s4258_s12, 0 }
  0x2b   : > { %4884 = sst [smem:[#allocation26_spill]] %s4023_s27  ;;  %p748_p2 = scmp.ne.s32.totalorder %s4003_s3, %s3999_s30 }
  0x2c   : > { %4885 = sst [smem:[#allocation27_spill]] %s4027_s29  ;;  %p4268_p3 = por %p4839_p1, %p235_p0 }
  0x2d   : > { %4886 = sst [smem:[#allocation28_spill]] %s4031_s2  ;;  %p749_p4 = scmp.eq.s32.totalorder %s4258_s12, 3 }
  0x2e   : > { %4887 = sst [smem:[#allocation29_spill]] %s4035_s7  ;;  %p754_p5 = scmp.ne.s32.totalorder %s3999_s30, %s3995_s9 }
  0x2f   : > { %s4888_s8 = scalar_select %p4268_p3, 1, 0 }
  0x30   : > { %p755_p6 = scmp.eq.s32.totalorder %s3177_s1, 3  ;;  %p4275_p7 = por %p749_p4, %p748_p2 }
  0x31   : > { %p3178_p8 = scmp.ge.s32.totalorder %s4035_s7, 1  ;;  %p762_p10 = scmp.lt.s32.totalorder %s4035_s7, 5 }
  0x32   : > { %s4889_s5 = scalar_select %p4275_p7, 1, 0 }
  0x33   : > { %p4280_p9 = por %p755_p6, %p754_p5  ;;  %p4285_p11 = pnand %p3178_p8, %p762_p10 }
  0x34   : > { %4890 = sst [smem:[#allocation30_spill]] %s4889_s5  ;;  %s4037_s28 = smov [#allocation4]  }
  0x35   : > { %s4891_s6 = scalar_select %p4280_p9, 1, 0 }
  0x36   : > { %s4893_s4 = scalar_select %p4285_p11, 1, 0 }
  0x37   : > { %4892 = sst [smem:[#allocation31_spill]] %s4891_s6  ;;  %s778_s25 = sshll.u32 %s4037_s28, 4  ;;  %s779_s25 = int_to_ptr.vmem [resolvable:$true] %s778_s25 }
  0x38   : > { %p3492_p12 = pneg %p4285_p11  ;;  %s55_s9 = sadd.s32 1, %s4027_s29 }
  0x39   : > { %s3698_s6 = scalar_lea.vmem %s779_s25, 16  ;;  %s3705_s28 = scalar_lea.vmem %s779_s25, 32 }
  0x3a   : > { %p4293_p13 = pnand %p3492_p12, %p4839_p1  ;;  %p3699_p2 = scmp.ne.s32.totalorder %s779_s25, %s3698_s6 }
  0x3b   : > { %p3706_p6 = scmp.lt.s32.totalorder %s779_s25, %s779_s25  ;;  %p3707_p8 = scmp.lt.s32.totalorder %s3705_s28, %s3698_s6 }
  0x3c   : > { %p4840_p0 = pneg %p4293_p13 }
  0x3d   : > { %p3708_p10 = por %p3707_p8, %p3706_p6 }
  0x3e   : > { %p3701_p4 = pnand %p3699_p2, %p4840_p0 }
  0x40   : > { %p3702_p5 = pneg %p3701_p4 }
  0x42   : > { %p3709_p9 = pnand %p3708_p10, %p3702_p5 }
  0x44   : > { %3712 = shalt.err (!%p3709_p9)
}
  0x45   : > { %s4895_s23 = sld [smem:[#allocation39_spill]]  ;;  %p56_p12 = scmp.ge.s32.totalorder %s55_s9, 2 }
  0x46   : > { %s58_s6 = sadd.s32 1, %s4031_s2  ;;  %s222_s28 = sadd.s32 1, %s4015_s0 }
  0x47   : > { %p229_p9 = scmp.ne.s32.totalorder %s4015_s0, %s4011_s10  ;;  %s4979_s9 = smov (%p56_p12, %s55_s9), 0 }
  0x48   : > { %4896 = sst [smem:[#allocation32_spill]] %s4979_s9  ;;  %s4981_s6 = smov (!%p56_p12, %s58_s6), %s4031_s2 }
  0x49   : > { %s219_s26 = ssub.s32 %s4027_s29, %s4979_s9  ;;  %p230_p2 = scmp.eq.s32.totalorder %s4035_s7, 0 }
  0x4a   : > { %p60_p4 = scmp.ge.s32.totalorder %s4981_s6, 2  ;;  %p220_p5 = scmp.eq.s32.totalorder %s219_s26, 0 }
  0x4b   : > { %3495 = dma.hbm_to_vmem [thread:$0]  (!%p4293_p13), %s4895_s23, 16, %s779_s25, [#allocation5]  }
  0x4c   : > { %p4318_p6 = por %p230_p2, %p229_p9  ;;  %p3526_p8 = scmp.lt.s32.totalorder %s4035_s7, 4 }
  0x4d   : > { %s4983_s6 = smov (%p60_p4, %s4981_s6), 0  ;;  %s855_s22 = sand.u32 1, %s4035_s7  }
  0x4e   : > { %4898 = sst [smem:[#allocation33_spill]] %s4983_s6  ;;  %s735_s25 = ssub.s32 %s4031_s2, %s4983_s6 }
  0x4f   : > { %s4326_s23 = scalar_select %p220_p5, %s4015_s0, %s222_s28  }
  0x50   : > { %p736_p10 = scmp.eq.s32.totalorder %s735_s25, 0  ;;  %s4332_s24 = sand.u32 1, %s4015_s0  }
  0x51   : > { %4899 = sst [smem:[#allocation34_spill]] %s4326_s23  ;;  %s4335_s9 = sshll.u32 %s4027_s29, 4 }
  0x52   : > { %s4900_s26 = sadd.s32 1, %s4003_s3  ;;  %s4902_s19 = sld [smem:[#allocation44_spill]] }
  0x53   : > { %s4340_s21 = scalar_select %p736_p10, %s4003_s3, %s4900_s26  }
  0x54   : > { %s858_s16 = scalar_lea.vmem [#allocation12], %s4332_s24  ;;  %p4349_p12 = pnand %p3526_p8, %p4318_p6 }
  0x55   : > { %4901 = sst [smem:[#allocation35_spill]] %s4340_s21  ;;  %s865_s28 = sshll.u32 %s858_s16, 4  ;;  %s866_s28 = int_to_ptr.vmem [resolvable:$true] %s865_s28 }
  0x56   : > { %s4904_s29 = sld [smem:[#allocation46_spill]]  ;;  %s4357_s26 = scalar_lea.sflag [#allocation5], %s855_s22 }
  0x57   : > { %p4841_p9 = pneg %p4349_p12  ;;  %s3726_s18 = scalar_lea.vmem %s866_s28, 16 }
  0x58   : > { %s863_s17 = scalar_lea.hbm %s4902_s19, %s4335_s9  ;;  %p3727_p2 = scmp.ne.s32.totalorder %s866_s28, %s3726_s18 }
  0x59   : > { %s4038_s16 = smov [#allocation12]  }
  0x5a   : > { %p3729_p4 = pnand %p3727_p2, %p4841_p9  ;;  %s3731_s19 = sshll.u32 %s4038_s16, 4  ;;  %s3732_s19 = int_to_ptr.vmem [resolvable:$false] %s3731_s19 }
  0x5b   : > { %s3733_s20 = scalar_lea.vmem %s3732_s19, 32  ;;  %p3734_p6 = scmp.lt.s32.totalorder %s866_s28, %s3732_s19 }
  0x5c   : > { %s888_s0 = scalar_lea.hbm %s4904_s29, %s4335_s9  ;;  %p3730_p5 = pneg %p3729_p4 }
  0x5d   : > { %p3735_p8 = scmp.lt.s32.totalorder %s3733_s20, %s3726_s18 }
  0x5f   : > { %p3736_p10 = por %p3735_p8, %p3734_p6 }
  0x61   : > { %p3737_p1 = pnand %p3736_p10, %p3730_p5 }
  0x63   : > { %3740 = shalt.err (!%p3737_p1)
}
  0x64   : > { %3508 = dma.hbm_to_vmem [thread:$0]  (!%p4349_p12), %s863_s17, 16, %s866_s28, %s4357_s26  }
  0x65   : > { %s883_s22 = scalar_lea.vmem [#allocation13], %s4332_s24  ;;  %s4039_s2 = smov [#allocation7]  }
  0x66   : > { %s890_s29 = sshll.u32 %s883_s22, 4  ;;  %s789_s5 = sshll.u32 %s4039_s2, 4  ;;  %s891_s29 = int_to_ptr.vmem [resolvable:$true] %s890_s29  ;;  %s790_s5 = int_to_ptr.vmem [resolvable:$true] %s789_s5 }
  0x67   : > { %s3754_s25 = scalar_lea.vmem %s891_s29, 16  ;;  %s4040_s18 = smov [#allocation13]  }
  0x68   : > { %p3755_p2 = scmp.ne.s32.totalorder %s891_s29, %s3754_s25  ;;  %s3759_s16 = sshll.u32 %s4040_s18, 4  ;;  %s3760_s16 = int_to_ptr.vmem [resolvable:$false] %s3759_s16 }
  0x69   : > { %s3761_s19 = scalar_lea.vmem %s3760_s16, 32  ;;  %p3762_p1 = scmp.lt.s32.totalorder %s891_s29, %s3760_s16 }
  0x6a   : > { %p3757_p4 = pnand %p3755_p2, %p4841_p9  ;;  %p3763_p5 = scmp.lt.s32.totalorder %s3761_s19, %s3754_s25 }
  0x6c   : > { %p3758_p0 = pneg %p3757_p4  ;;  %p3764_p6 = por %p3763_p5, %p3762_p1 }
  0x6e   : > { %p3765_p8 = pnand %p3764_p6, %p3758_p0 }
  0x70   : > { %3768 = shalt.err (!%p3765_p8)
}
  0x71   : > { %3511 = dma.hbm_to_vmem [thread:$0]  (!%p4349_p12), %s888_s0, 16, %s891_s29, %s4357_s26  }
  0x72   : > { %s3780_s20 = scalar_lea.vmem %s790_s5, 16  ;;  %p4906_p2 = pneg %p4293_p13 }
  0x73   : > { %p3781_p10 = scmp.ne.s32.totalorder %s790_s5, %s3780_s20  ;;  %s3787_s22 = scalar_lea.vmem %s790_s5, 32 }
  0x74   : > { %p3788_p0 = scmp.lt.s32.totalorder %s790_s5, %s790_s5  ;;  %p3789_p1 = scmp.lt.s32.totalorder %s3787_s22, %s3780_s20 }
  0x75   : > { %p3783_p4 = pnand %p3781_p10, %p4906_p2 }
  0x76   : > { %p3790_p5 = por %p3789_p1, %p3788_p0 }
  0x77   : > { %p3784_p9 = pneg %p3783_p4 }
  0x79   : > { %p3791_p6 = pnand %p3790_p5, %p3784_p9 }
  0x7b   : > { %3794 = shalt.err (!%p3791_p6)
}
  0x7c   : > { %s4907_s18 = sld [smem:[#allocation40_spill]]  ;;  %s908_s17 = scalar_lea.vmem [#allocation14], %s4332_s24 }
  0x7d   : > { %s4908_s16 = sld [smem:[#allocation48_spill]]  ;;  %s915_s28 = sshll.u32 %s908_s17, 4  ;;  %s916_s28 = int_to_ptr.vmem [resolvable:$true] %s915_s28 }
  0x7e   : > { %s3808_s20 = scalar_lea.vmem %s916_s28, 16  ;;  %p4909_p9 = pneg %p4349_p12 }
  0x7f   : > { %p3809_p8 = scmp.ne.s32.totalorder %s916_s28, %s3808_s20  ;;  %s4041_s22 = smov [#allocation14]  }
  0x80   : > { %s3813_s23 = sshll.u32 %s4041_s22, 4  ;;  %s3814_s23 = int_to_ptr.vmem [resolvable:$false] %s3813_s23 }
  0x81   : > { %p3811_p10 = pnand %p3809_p8, %p4909_p9  ;;  %s3815_s2 = scalar_lea.vmem %s3814_s23, 32 }
  0x82   : > { %3498 = dma.hbm_to_vmem [thread:$0]  (!%p4293_p13), %s4907_s18, 16, %s790_s5, [#allocation8]  }
  0x83   : > { %s913_s19 = scalar_lea.hbm %s4908_s16, %s4335_s9  ;;  %p3812_p2 = pneg %p3811_p10 }
  0x84   : > { %p3816_p4 = scmp.lt.s32.totalorder %s916_s28, %s3814_s23  ;;  %p3817_p0 = scmp.lt.s32.totalorder %s3815_s2, %s3808_s20 }
  0x86   : > { %p3818_p1 = por %p3817_p0, %p3816_p4 }
  0x88   : > { %p3819_p5 = pnand %p3818_p1, %p3812_p2 }
  0x8a   : > { %3822 = shalt.err (!%p3819_p5)
}
  0x8b   : > { %3514 = dma.hbm_to_vmem [thread:$0]  (!%p4349_p12), %s913_s19, 16, %s916_s28, %s4357_s26  }
  0x8c   : > { %s4042_s5 = smov [#allocation9]   ;;  %s4043_s18 = smov [#allocation10]  }
  0x8d   : > { %s800_s25 = sshll.u32 %s4042_s5, 4  ;;  %s811_s0 = sshll.u32 %s4043_s18, 4  ;;  %s801_s25 = int_to_ptr.vmem [resolvable:$true] %s800_s25  ;;  %s812_s0 = int_to_ptr.vmem [resolvable:$true] %s811_s0 }
  0x8e   : > { %s3834_s29 = scalar_lea.vmem %s801_s25, 16  ;;  %p4910_p8 = pneg %p4293_p13 }
  0x8f   : > { %p3835_p6 = scmp.ne.s32.totalorder %s801_s25, %s3834_s29  ;;  %s3841_s23 = scalar_lea.vmem %s801_s25, 32 }
  0x90   : > { %p3842_p4 = scmp.lt.s32.totalorder %s801_s25, %s801_s25  ;;  %p3843_p2 = scmp.lt.s32.totalorder %s3841_s23, %s3834_s29 }
  0x91   : > { %p3837_p9 = pnand %p3835_p6, %p4910_p8 }
  0x92   : > { %p3844_p0 = por %p3843_p2, %p3842_p4 }
  0x93   : > { %p3838_p10 = pneg %p3837_p9 }
  0x95   : > { %p3845_p1 = pnand %p3844_p0, %p3838_p10 }
  0x97   : > { %3848 = shalt.err (!%p3845_p1)
}
  0x98   : > { %s4911_s17 = sld [smem:[#allocation41_spill]]  ;;  %s3860_s28 = scalar_lea.vmem %s812_s0, 128 }
  0x99   : > { %p3861_p5 = scmp.ne.s32.totalorder %s812_s0, %s3860_s28  ;;  %p4912_p7 = pmov %p4910_p8 }
  0x9a   : > { %p3868_p9 = scmp.lt.s32.totalorder %s812_s0, %s812_s0  ;;  %p3869_p3 = scmp.lt.s32.totalorder %s3860_s28, %s3860_s28 }
  0x9b   : > { %p3863_p6 = pnand %p3861_p5, %p4912_p7 }
  0x9c   : > { %p3870_p11 = por %p3869_p3, %p3868_p9 }
  0x9d   : > { %p3864_p8 = pneg %p3863_p6 }
  0x9e   : > { %3501 = dma.hbm_to_vmem [thread:$0]  (!%p4293_p13), %s4911_s17, 16, %s801_s25, [#allocation8]  }
  0x9f   : > { %p3871_p4 = pnand %p3870_p11, %p3864_p8 }
  0xa1   : > { %3874 = shalt.err (!%p3871_p4)
}
  0xa2   : > { %s4913_s2 = sld [smem:[#allocation42_spill]]  ;;  %s939_s29 = scalar_lea.vmem [#allocation15], %s4332_s24 }
  0xa3   : > { %s4914_s14 = sld [smem:[#allocation51_spill]]  ;;  %s946_s23 = sshll.u32 %s939_s29, 4  ;;  %s947_s23 = int_to_ptr.vmem [resolvable:$true] %s946_s23 }
  0xa4   : > { %s3888_s16 = scalar_lea.vmem %s947_s23, 16  ;;  %p4915_p7 = pneg %p4349_p12 }
  0xa5   : > { %p3889_p3 = scmp.ne.s32.totalorder %s947_s23, %s3888_s16  ;;  %s4044_s1 = smov [#allocation15]  }
  0xa6   : > { %s3893_s19 = sshll.u32 %s4044_s1, 4  ;;  %s3894_s19 = int_to_ptr.vmem [resolvable:$false] %s3893_s19 }
  0xa7   : > { %p3891_p11 = pnand %p3889_p3, %p4915_p7  ;;  %s3895_s17 = scalar_lea.vmem %s3894_s19, 32 }
  0xa8   : > { %3504 = dma.hbm_to_vmem [thread:$0]  (!%p4293_p13), %s4913_s2, 128, %s812_s0, [#allocation11]  }
  0xa9   : > { %s944_s18 = scalar_lea.hbm %s4914_s14, %s4335_s9  ;;  %p3892_p10 = pneg %p3891_p11 }
  0xaa   : > { %p3896_p2 = scmp.lt.s32.totalorder %s947_s23, %s3894_s19  ;;  %p3897_p0 = scmp.lt.s32.totalorder %s3895_s17, %s3888_s16 }
  0xac   : > { %p3898_p13 = por %p3897_p0, %p3896_p2 }
  0xae   : > { %p3899_p1 = pnand %p3898_p13, %p3892_p10 }
  0xb0   : > { %3902 = shalt.err (!%p3899_p1)
}
  0xb1   : > { %3517 = dma.hbm_to_vmem [thread:$0]  (!%p4349_p12), %s944_s18, 16, %s947_s23, %s4357_s26  }
  0xb2   : > { %p4916_p5 = scmp.ne.s32.totalorder %s4893_s4, 0 }
  0xb4   : > { %1001 = sbr.rel (%p4916_p5) target bundleno = 5170 (0x1432), region = 132 }
  0xb9   : > { %p4917_p6 = scmp.eq.s32.totalorder %s4258_s12, 0 }
  0xbb   : > { %3974 = dma.done.wait (%p4917_p6), [#allocation5], 16   ;;  %p4918_p8 = pmov %p4917_p6 }
  0xbc   : > { %p4919_p9 = pmov %p4917_p6 }
  0xbd   : > { %3976 = vsyncadd (%p4918_p8), [#allocation5], 4294967280 }
  0xbe   : > { %3978 = dma.done.wait (%p4919_p9), [#allocation8], 32   ;;  %p4920_p4 = pmov %p4917_p6 }
  0xc0   : > { %3980 = vsyncadd (%p4920_p4), [#allocation8], 4294967264  ;;  %p4921_p3 = pmov %p4920_p4 }
  0xc2   : > { %3982 = dma.done.wait (%p4921_p3), [#allocation11], 128   ;;  %p4922_p12 = pmov %p4921_p3 }
  0xc3   : > { %s1019_s24 = sand.u32 1, %s4258_s12   ;;  %s4441_s9 = sand.u32 1, %s4011_s10  }
  0xc4   : > { %3984 = vsyncadd (%p4922_p12), [#allocation11], 4294967168  ;;  %s1020_s4 = scalar_lea.sflag [#allocation5], %s1019_s24  ;;  %p4923_p7 = scmp.ne.s32.totalorder %s4888_s8, 0 }
  0xc6   : > { %3986 = dma.done.wait (%p4923_p7), %s1020_s4, 64  }
  0xc7   : > { %3988 = vsyncadd (%p4923_p7), %s1020_s4, 4294967232  ;;  %p1181_p11 = scmp.lt.s32.totalorder %s4023_s27, 1  ;;  %p1185_p10 = scmp.lt.s32.totalorder %s4019_s11, 1 }
  0xc8   : > { %s4924_s22 = sld [smem:[#allocation37_spill]]  ;;  %s1030_s24 = scalar_lea.vmem [#allocation13], %s4441_s9 }
  0xc9   : > { %s1182_s0 = scalar_select %p1181_p11, %s4023_s27, 1 }
  0xca   : > { %s4453_s12 = scalar_select %p1185_p10, %s4019_s11, 1 }
  0xcb   : > { %s3193_s8 = sshll.u32 %s1182_s0, 3  ;;  %s4925_s29 = sld [smem:[#allocation43_spill]] }
  0xcc   : > { %s3270_s5 = sshll.u32 %s4453_s12, 4  ;;  %s4926_s19 = sld [smem:[#allocation45_spill]] }
  0xcd   : > { %s4927_s0 = sld [smem:[#allocation47_spill]]  ;;  %s1038_s4 = scalar_lea.vmem [#allocation14], %s4441_s9 }
  0xce   : > { %s1184_s2 = scalar_lea.vmem %s4924_s22, %s3193_s8  ;;  %s4928_s22 = sld [smem:[#allocation49_spill]] }
  0xcf   : > { %s4931_s10 = sld [smem:[#allocation53_spill]]  ;;  %s3275_s8 = sshll.u32 %s4453_s12, 6 }
  0xd0   : > { %s4934_s7 = sld [smem:[#allocation56_spill]]  ;;  %s4938_s3 = sand.u32 1, %s3999_s30  }
  0xd1   : > { %s4462_s23 = scalar_lea.vmem %s4925_s29, %s3270_s5  ;;  %s4935_s29 = sld [smem:[#allocation55_spill]] }
  0xd2   : > { %s4467_s17 = scalar_lea.vmem %s4926_s19, %s3270_s5  ;;  %s4936_s16 = sld [smem:[#allocation57_spill]] }
  0xd3   : > { %s4472_s28 = scalar_lea.vmem %s4927_s0, %s3270_s5  ;;  %s4937_s19 = sld [smem:[#allocation58_spill]] }
  0xd4   : > { %s4477_s6 = scalar_lea.vmem %s4928_s22, %s3270_s5  ;;  %s1046_s0 = scalar_lea.vmem [#allocation15], %s4441_s9 }
  0xd5   : > { %s4490_s21 = scalar_lea.vmem %s4931_s10, %s3270_s5  ;;  %p3206_p2 = scmp.ne.s32.totalorder %s4019_s11, 0 }
  0xd6   : > { %4932 = sst [smem:[#allocation36_spill]] %s4490_s21  ;;  %s1226_s27 = scalar_lea.vmem %s4934_s7, %s4453_s12 }
  0xd7   : > { %s4504_s13 = scalar_lea.vmem %s4935_s29, %s3275_s8  ;;  %s4519_s21 = scalar_lea.vmem [#allocation16], %s4938_s3 }
  0xd8   : > { %s1229_s1 = scalar_lea.vmem %s4936_s16, %s4453_s12  ;;  %1237 = sbr.rel (%p3206_p2) target bundleno = 735 (0x2df), region = 168 }
  0xd9   : > { %s1232_s15 = scalar_lea.vmem %s4937_s19, %s4453_s12  ;;  %s4939_s8 = sld [smem:[#allocation38_spill]] (!%p3206_p2) }
  0xdd   : > { %v4045_v2 = vmov 0.0   ;;  %v1238_v3 = vld [vmem:[%s1184_s2] sm:$0xff]  ;;  %vm4046_vm0 = vmmov 0   ;;  %vm1255_vm1 = vcmask 130048   ;;  %v3207_v5 = vld [vmem:[#allocation4] ss:$0 sm:$0xff] }
  0xde   : > { %3329 = vmatprep.subr.bf16.mxu0 %v4045_v2  ;;  %3331 = vmatprep.mubr.msk.bf16.mxu0 %vm4046_vm0, %v4045_v2  ;;  %v1241_v4 = vpack.c.bf16 %v1238_v3, %v1238_v3  ;;  %vm1301_vm2 = vcmask 261120   ;;  %v3210_v21 = vld [vmem:[#allocation7] ss:$0 sm:$0xff]  ;;  %v3211_v23 = vld [vmem:[#allocation9] ss:$0 sm:$0xff]  ;;  %v1331_v26 = vld [vmem:[#allocation10] sm:$0xff] }
  0xdf   : > { %v3634_v1 = vld [vmem:[%s4939_s8] sm:$0xff]  }
  0xe0   : > { %3330 = vmatpush3.bf16.msra.mxu0 %v3634_v1 }
  0xe3   : > { %3332 = vmatmul.mubr.msk.bf16.vlgmr.msra.gmra.mxu0 %vm1255_vm1, %v1241_v4 }
 0x1a3   : > { %v1293_v6 = vpop.f32.mrf.mxu0 }
 0x1a4   : > { %v1294_v7 = vadd.f32 %v3207_v5, %v1293_v6 }
 0x1a5   : > { %v3333_v8 = vpop.f32.mrf.mxu0 }
 0x1a6   : > { %v1302_v9 = vsel %vm1301_vm2, %v1294_v7, 0.0 }
 0x1a7   : > { %1303 = vadd.xlane.f32.xlu0 %v1302_v9  ;;  %v1296_v10 = vpop.f32.mrf.mxu0 }
 0x1a9   : > { %v3334_v11 = vpop.f32.mrf.mxu0 }
 0x230   : > { %v1304_v12 = vpop.xlane.xlu0 %1303 }
 0x231   : > { %v1306_v13 = vmul.f32 0.03125, %v1304_v12 }
 0x233   : > { %v1307_v14 = vsub.f32 %v1294_v7, %v1306_v13 }
 0x235   : > { %v1308_v15 = vmul.f32 %v1307_v14, %v1307_v14 }
 0x237   : > { %v1309_v16 = vsel %vm1301_vm2, %v1308_v15, 0.0 }
 0x238   : > { %1310 = vadd.xlane.f32.xlu0 %v1309_v16 }
 0x2c1   : > { %v1311_v17 = vpop.xlane.xlu0 %1310 }
 0x2c2   : > { %v1312_v18 = vmul.f32 0.03125, %v1311_v17 }
 0x2c4   : > { %v1313_v19 = vadd.f32 1e-05, %v1312_v18 }
 0x2c6   : > { %3635 = vrsqrt.f32 %v1313_v19 }
 0x2d3   : > { %v3636_v20 = vpop.eup %3635 }
 0x2d4   : > { %v1315_v22 = vmul.f32 %v3636_v20, %v1307_v14 }
 0x2d6   : > { %v1322_v24 = vmul.f32 %v3210_v21, %v1315_v22 }
 0x2d8   : > { %v1329_v25 = vadd.f32 %v3211_v23, %v1322_v24 }
 0x2da   : > { %v1330_v27 = vmul.f32 5.656854, %v1329_v25 }
 0x2dc   : > { %v1332_v28 = vadd.f32 %v1331_v26, %v1330_v27 }
 0x2de   : > { %1333 = vst.msk [vmem:[#allocation2] sm:$0xff] %vm1301_vm2, %v1332_v28 }
 0x2df PF: > { %v3637_v29 = vld [vmem:[%s4462_s23 + $0x8] sm:$0xff]   ;;  %v4047_v30 = vmov 0.0   ;;  %v3638_v31 = vld [vmem:[%s4462_s23] sm:$0xff]   ;;  %vm4048_vm3 = vmmov 0   ;;  %vm1359_vm4 = vcmask 261120   ;;  %vm1533_vm5 = vcmask 64512  }
 0x2e0   : > { %3335 = vmatprep.subr.bf16.mxu1 %v4047_v30  ;;  %3351 = vmatprep.subr.bf16.mxu0 %v4047_v30  ;;  %v3639_v33 = vld [vmem:[%s4467_s17 + $0x8] sm:$0xff]   ;;  %v3640_v35 = vld [vmem:[%s4467_s17] sm:$0xff]   ;;  %s4940_s3 = scalar_lea.vmem [#allocation12], %s4441_s9  ;;  %s4049_s2 = smov 120   ;;  %vm1867_vm6 = vcmask 1043456  }
 0x2e1   : > { %3336 = vmatpush3.bf16.msra.mxu1 %v3637_v29  ;;  %3339 = vmatprep.mubr.msk.bf16.mxu1 %vm4048_vm3, %v4047_v30  ;;  %v3641_v36 = vld [vmem:[%s4472_s28 + $0x8] sm:$0xff]   ;;  %v3642_v37 = vld [vmem:[%s4472_s28] sm:$0xff]   ;;  %s4050_s23 = smov 112   ;;  %s4051_s17 = smov 104  }
 0x2e2   : > { %3337 = vmatprep.subr.bf16.mxu1 %v4047_v30  ;;  %3355 = vmatprep.mubr.msk.bf16.mxu0 %vm4048_vm3, %v4047_v30  ;;  %v3216_v42 = vld [vmem:[%s1030_s24] ss:$0 sm:$0xff]  ;;  %v1530_v15 = vld [vmem:[%s4477_s6 + $0x4] sm:$0xf]  ;;  %s4941_s20 = sld [smem:[#allocation50_spill]]  ;;  %p3258_p0 = scmp.ne.s32.totalorder %s4019_s11, 1 }
 0x2e3   : > { %3352 = vmatpush3.bf16.msra.mxu0 %v3641_v36  ;;  %v3212_v44 = vld [vmem:[%s4940_s3] ss:$0 sm:$0xff]  ;;  %v1869_v16 = vsel %vm1867_vm6, %v1530_v15, 0  ;;  %s4943_s25 = sld [smem:[#allocation36_spill]] }
 0x2e4   : > { %3353 = vmatprep.subr.bf16.mxu0 %v4047_v30  ;;  %v3220_v50 = vld [vmem:[%s1038_s4] ss:$0 sm:$0xff]  ;;  %s4944_s14 = sld [smem:[#allocation52_spill]] }
 0x2e5   : > { %v4534_v32 = vld [vmem:[#allocation2] sm:$0xff]  ;;  %3338 = vmatpush3.bf16.msra.mxu1 %v3638_v31  ;;  %s4946_s5 = sld [smem:[#allocation54_spill]] }
 0x2e6   : > { %v1339_v34 = vpack.c.bf16 %v4534_v32, %v4534_v32  ;;  %3343 = vmatprep.subr.bf16.mxu1 %v4047_v30  ;;  %v1529_v19 = vld [vmem:[%s4477_s6] sm:$0xf]  ;;  %s4952_s28 = sld [smem:[#allocation59_spill]] (!%p3258_p0) }
 0x2e7   : > { %3354 = vmatpush3.bf16.msra.mxu0 %v3642_v37  ;;  %v1915_v22 = vsel %vm1867_vm6, %v1529_v19, 0  ;;  %s4954_s18 = sld [smem:[#allocation63_spill]] (!%p3258_p0) }
 0x2e8   : > { %3340 = vmatmul.mubr.msk.bf16.vlgmr.msra.gmra.mxu1 %vm1359_vm4, %v1339_v34  ;;  %3369 = vmatprep.subr.mxu0 %v4047_v30  ;;  %s4942_s22 = scalar_lea.vmem %s4941_s20, %s4453_s12 }
 0x2e9   : > { %3344 = vmatpush3.bf16.msra.mxu1 %v3639_v33  ;;  %3347 = vmatprep.mubr.msk.bf16.mxu1 %vm4048_vm3, %v4047_v30 }
 0x2ea   : > { %3345 = vmatprep.subr.bf16.mxu1 %v4047_v30  ;;  %3356 = vmatmul.mubr.msk.bf16.vlgmr.msra.gmra.mxu0 %vm1359_vm4, %v1339_v34  ;;  %s4945_s26 = scalar_lea.vmem %s4944_s14, %s4453_s12 }
 0x2eb   : > { %3371 = vmatprep.mubr.msk.f32.mxu0 %vm4048_vm3, %v4047_v30  ;;  %s4947_s19 = scalar_lea.vmem %s4946_s5, %s4453_s12  ;;  %s4955_s5 = sld [smem:[#allocation62_spill]] (!%p3258_p0) }
 0x2ed   : > { %3346 = vmatpush3.bf16.msra.mxu1 %v3640_v35 }
 0x2ee   : > { %3359 = vmatprep.subr.mxu1 %v4047_v30 }
 0x2f0   : > { %3348 = vmatmul.mubr.msk.bf16.vlgmr.msra.gmra.mxu1 %vm1359_vm4, %v1339_v34 }
 0x2f1   : > { %3361 = vmatprep.mubr.msk.f32.mxu1 %vm4048_vm3, %v4047_v30 }
 0x3a8   : > { %v1397_v38 = vpop.f32.mrf.mxu1 }
 0x3a9   : > { %v4569_v47 = vadd.f32 %v3212_v44, %v1397_v38 }
 0x3aa   : > { %v3341_v39 = vpop.f32.mrf.mxu1  ;;  %v1523_v51 = vpop.f32.mrf.mxu0 }
 0x3ab   : > { %v4580_v52 = vadd.f32 %v3220_v50, %v1523_v51 }
 0x3ac   : > { %v1400_v40 = vpop.f32.mrf.mxu1  ;;  %v3357_v53 = vpop.f32.mrf.mxu0 }
 0x3ae   : > { %v3342_v41 = vpop.f32.mrf.mxu1  ;;  %v1526_v54 = vpop.f32.mrf.mxu0 }
 0x3b0   : > { %v1460_v43 = vpop.f32.mrf.mxu1  ;;  %v3358_v55 = vpop.f32.mrf.mxu0 }
 0x3b1   : > { %v4563_v45 = vadd.f32 %v3216_v42, %v1460_v43 }
 0x3b2   : > { %v3349_v46 = vpop.f32.mrf.mxu1 }
 0x3b3   : > { %1698 = vrot.lane.b32.xlu0 %v4563_v45, %s4049_s2  ;;  %3360 = vmatpush3.xpose.msk.msra.mxu1 %vm1533_vm5, %v4563_v45 }
 0x3b4   : > { %v1463_v48 = vpop.f32.mrf.mxu1  ;;  %3364 = vmatprep.subr.mxu1 %v4047_v30 }
 0x3b6   : > { %v3350_v49 = vpop.f32.mrf.mxu1  ;;  %3362 = vmatmul.mubr.msk.f32.vlgmr.msra.gmra.mxu1 %vm1533_vm5, %v4569_v47 }
 0x3b7   : > { %1696 = vrot.lane.b32.xlu0 %v4569_v47, %s4049_s2  ;;  %3366 = vmatprep.mubr.msk.f32.mxu1 %vm4048_vm3, %v4047_v30 }
 0x3b8   : > { %3365 = vmatpush3.msra.mxu1 %v4580_v52 }
 0x3b9   : > { %3374 = vmatprep.subr.mxu1 %v4047_v30 }
 0x425   : > { %v1699_v56 = vpop.permute.xlu0 %1698 }
 0x426   : > { %3370 = vmatpush3.xpose.msk.msra.mxu0 %vm1533_vm5, %v1699_v56 }
 0x427   : > { %3379 = vmatprep.subr.bf16.mxu0 %v4047_v30 }
 0x429   : > { %v1697_v57 = vpop.permute.xlu0 %1696 }
 0x42a   : > { %3372 = vmatmul.mubr.msk.f32.vlgmr.msra.gmra.mxu0 %vm1533_vm5, %v1697_v57 }
 0x42b   : > { %3381 = vmatprep.mubr.msk.bf16.mxu0 %vm4048_vm3, %v4047_v30  ;;  %3380 = vmatpush3.bf16.msra.mxu0 %v1869_v16 }
 0x42c   : > { %3391 = vmatprep.subr.mxu0 %v4047_v30 }
 0x476   : > { %v1606_v58 = vpop.f32.mrf.mxu1 }
 0x477   : > { %v1610_v59 = vmul.f32 0.35355338, %v1606_v58 }
 0x478   : > { %v3363_v60 = vpop.f32.mrf.mxu1 }
 0x479   : > { %v1611_v61 = vsel %vm1533_vm5, %v1610_v59, -inf }
 0x47a   : > { %1612 = vmax.xlane.f32.xlu1 %v1611_v61 }
 0x4ea   : > { %v1770_v62 = vpop.f32.mrf.mxu0 }
 0x4eb   : > { %v1774_v63 = vmul.f32 0.35355338, %v1770_v62 }
 0x4ec   : > { %v3373_v0 = vpop.f32.mrf.mxu0 }
 0x4ed   : > { %v1775_v1 = vsel %vm1533_vm5, %v1774_v63, -inf }
 0x4ee   : > { %1776 = vmax.xlane.f32.xlu1 %v1775_v1 }
 0x503   : > { %v1613_v2 = vpop.xlane.xlu1 %1612 }
 0x504   : > { %v1614_v3 = vsub.f32 %v1610_v59, %v1613_v2 }
 0x506   : > { %v1615_v4 = vmul.f32 1.442695, %v1614_v3 }
 0x508   : > { %3653 = vpow2.f32 %v1615_v4 }
 0x515   : > { %v3654_v5 = vpop.eup %3653 }
 0x516   : > { %v1617_v6 = vsel %vm1533_vm5, %v3654_v5, 0.0 }
 0x517   : > { %1618 = vadd.xlane.f32.xlu0 %v1617_v6 }
 0x52d   : > { %2047 = vrot.lane.b32.xlu0 %v4580_v52, %s4050_s23 }
 0x577   : > { %v1777_v7 = vpop.xlane.xlu1 %1776 }
 0x578   : > { %v1778_v8 = vsub.f32 %v1774_v63, %v1777_v7 }
 0x57a   : > { %v1779_v9 = vmul.f32 1.442695, %v1778_v8 }
 0x57c   : > { %3655 = vpow2.f32 %v1779_v9 }
 0x589   : > { %v3656_v10 = vpop.eup %3655 }
 0x58a   : > { %v1781_v11 = vsel %vm1533_vm5, %v3656_v10, 0.0 }
 0x58b   : > { %1782 = vadd.xlane.f32.xlu1 %v1781_v11 }
 0x59c   : > { %1787 = vrot.lane.b32.xlu1 %v4580_v52, %s4049_s2 }
 0x5a0   : > { %v1619_v12 = vpop.xlane.xlu0 %1618  ;;  %1959 = vrot.lane.b32.xlu1 %v4563_v45, %s4050_s23 }
 0x5a1   : > { %3657 = vrcp.f32 %v1619_v12 }
 0x5a4   : > { %1957 = vrot.lane.b32.xlu1 %v4569_v47, %s4050_s23  ;;  %v2048_v26 = vpop.permute.xlu0 %2047 }
 0x5ae   : > { %v3658_v13 = vpop.eup %3657 }
 0x5af   : > { %v1621_v14 = vmul.f32 %v3658_v13, %v3654_v5 }
 0x5b1   : > { %3367 = vmatmul.mubr.msk.f32.vlgmr.msra.gmra.mxu1 %vm1533_vm5, %v1621_v14 }
 0x5b2   : > { %3376 = vmatprep.mubr.msk.f32.mxu1 %vm4048_vm3, %v4047_v30 }
 0x614   : > { %v1783_v17 = vpop.xlane.xlu1 %1782 }
 0x615   : > { %3659 = vrcp.f32 %v1783_v17 }
 0x618   : > { %v1788_v18 = vpop.permute.xlu1 %1787 }
 0x619   : > { %3375 = vmatpush3.msra.mxu1 %v1788_v18 }
 0x61a   : > { %3385 = vmatprep.subr.bf16.mxu1 %v4047_v30 }
 0x61c   : > { %v1960_v31 = vpop.permute.xlu1 %1959 }
 0x620   : > { %v1958_v33 = vpop.permute.xlu1 %1957 }
 0x622   : > { %v3660_v20 = vpop.eup %3659 }
 0x623   : > { %v1785_v21 = vmul.f32 %v3660_v20, %v3656_v10 }
 0x625   : > { %3377 = vmatmul.mubr.msk.f32.vlgmr.msra.gmra.mxu1 %vm1533_vm5, %v1785_v21 }
 0x626   : > { %3386 = vmatpush3.bf16.msra.mxu1 %v1915_v22  ;;  %3387 = vmatprep.mubr.msk.bf16.mxu1 %vm4048_vm3, %v4047_v30  ;;  %v3240_v22 = vld [vmem:[%s4942_s22] ss:$0 sm:$0xff]  ;;  %s4953_s22 = sld [smem:[#allocation60_spill]] (!%p3258_p0) }
 0x627   : > { %3396 = vmatprep.subr.mxu1 %v4047_v30 }
 0x671   : > { %v1691_v23 = vpop.f32.mrf.mxu1 }
 0x672   : > { %v1695_v24 = vpack.c.bf16 %v1691_v23, %v1691_v23 }
 0x673   : > { %v3368_v25 = vpop.f32.mrf.mxu1 }
 0x674   : > { %3388 = vmatmul.mubr.msk.bf16.vlgmr.msra.gmra.mxu1 %vm1533_vm5, %v1695_v24 }
 0x675   : > { %3397 = vmatpush3.msra.mxu1 %v2048_v26  ;;  %3398 = vmatprep.mubr.msk.f32.mxu1 %vm4048_vm3, %v4047_v30 }
 0x676   : > { %3407 = vmatprep.subr.mxu1 %v4047_v30 }
 0x6e5   : > { %v1859_v27 = vpop.f32.mrf.mxu1 }
 0x6e6   : > { %v1863_v28 = vpack.c.bf16 %v1859_v27, %v1859_v27 }
 0x6e7   : > { %v3378_v29 = vpop.f32.mrf.mxu1 }
 0x6e8   : > { %3382 = vmatmul.mubr.msk.bf16.vlgmr.msra.gmra.mxu0 %vm1533_vm5, %v1863_v28 }
 0x6e9   : > { %3392 = vmatpush3.xpose.msk.msra.mxu0 %vm1533_vm5, %v1960_v31  ;;  %3393 = vmatprep.mubr.msk.f32.mxu0 %vm4048_vm3, %v4047_v30 }
 0x6ea   : > { %3401 = vmatprep.subr.bf16.mxu0 %v4047_v30 }
 0x6f0   : > { %3394 = vmatmul.mubr.msk.f32.vlgmr.msra.gmra.mxu0 %vm1533_vm5, %v1958_v33 }
 0x6f1   : > { %3403 = vmatprep.mubr.msk.bf16.mxu0 %vm4048_vm3, %v4047_v30 }
 0x734   : > { %v1951_v34 = vpop.f32.mrf.mxu1 }
 0x736   : > { %v3389_v35 = vpop.f32.mrf.mxu1 }
 0x738   : > { %v1954_v36 = vpop.f32.mrf.mxu1 }
 0x73a   : > { %v3390_v37 = vpop.f32.mrf.mxu1 }
 0x73b   : > { %v3643_v37 = vld [vmem:[%s4943_s25 + $0x8] sm:$0xff]  }
 0x7a8   : > { %v1905_v38 = vpop.f32.mrf.mxu0 }
 0x7a9   : > { %v1952_v7 = vadd.f32 %v1951_v34, %v1905_v38  ;;  %v3644_v38 = vld [vmem:[%s4943_s25] sm:$0xff]  }
 0x7aa   : > { %v3383_v39 = vpop.f32.mrf.mxu0 }
 0x7ac   : > { %v1908_v40 = vpop.f32.mrf.mxu0 }
 0x7ae   : > { %v3384_v41 = vpop.f32.mrf.mxu0 }
 0x7b0   : > { %v2031_v42 = vpop.f32.mrf.mxu0 }
 0x7b1   : > { %v2035_v43 = vmul.f32 0.35355338, %v2031_v42  ;;  %v3241_v42 = vld [vmem:[%s1046_s0] ss:$0 sm:$0xff] }
 0x7b2   : > { %v3395_v44 = vpop.f32.mrf.mxu0 }
 0x7b3   : > { %v2036_v46 = vsel %vm1533_vm5, %v2035_v43, -inf  ;;  %v3242_v44 = vld [vmem:[%s4945_s26] ss:$0 sm:$0xff] }
 0x7b4   : > { %2037 = vmax.xlane.f32.xlu1 %v2036_v46 }
 0x83d   : > { %v2038_v48 = vpop.xlane.xlu1 %2037 }
 0x83e   : > { %v2039_v49 = vsub.f32 %v2035_v43, %v2038_v48 }
 0x840   : > { %v2040_v50 = vmul.f32 1.442695, %v2039_v49 }
 0x842   : > { %3661 = vpow2.f32 %v2040_v50  ;;  %v3645_v50 = vld [vmem:[%s4504_s13 + $0x38] sm:$0xff]  }
 0x84f   : > { %v3662_v51 = vpop.eup %3661 }
 0x850   : > { %v2042_v53 = vsel %vm1533_vm5, %v3662_v51, 0.0 }
 0x851   : > { %2043 = vadd.xlane.f32.xlu0 %v2042_v53  ;;  %v3647_v53 = vld [vmem:[%s4504_s13 + $0x28] sm:$0xff]  }
 0x867   : > { %2173 = vrot.lane.b32.xlu0 %v4563_v45, %s4051_s17  ;;  %v1531_v45 = vld [vmem:[%s4477_s6 + $0x8] sm:$0xf] }
 0x86b   : > { %2171 = vrot.lane.b32.xlu0 %v4569_v47, %s4051_s17  ;;  %v2128_v47 = vsel %vm1867_vm6, %v1531_v45, 0  ;;  %v3243_v45 = vld [vmem:[%s4947_s19] ss:$0 sm:$0xff] }
 0x86c   : > { %3402 = vmatpush3.bf16.msra.mxu0 %v2128_v47 }
 0x86d   : > { %3431 = vmatprep.subr.bf16.mxu0 %v4047_v30 }
 0x8da   : > { %v2044_v54 = vpop.xlane.xlu0 %2043 }
 0x8db   : > { %3663 = vrcp.f32 %v2044_v54  ;;  %v3648_v54 = vld [vmem:[%s4504_s13 + $0x20] sm:$0xff]  }
 0x8de   : > { %v2174_v56 = vpop.permute.xlu0 %2173 }
 0x8e2   : > { %v2172_v58 = vpop.permute.xlu0 %2171 }
 0x8e8   : > { %v3664_v55 = vpop.eup %3663 }
 0x8e9   : > { %v2046_v57 = vmul.f32 %v3664_v55, %v3662_v51  ;;  %v3646_v51 = vld [vmem:[%s4504_s13 + $0x30] sm:$0xff]   ;;  %v3649_v55 = vld [vmem:[%s4504_s13 + $0x18] sm:$0xff]  }
 0x8eb   : > { %3399 = vmatmul.mubr.msk.f32.vlgmr.msra.gmra.mxu1 %vm1533_vm5, %v2046_v57  ;;  %v3651_v57 = vld [vmem:[%s4504_s13 + $0x8] sm:$0xff]  }
 0x8ec   : > { %3408 = vmatpush3.xpose.msk.msra.mxu1 %vm1533_vm5, %v2174_v56  ;;  %3409 = vmatprep.mubr.msk.f32.mxu1 %vm4048_vm3, %v4047_v30  ;;  %v3650_v56 = vld [vmem:[%s4504_s13 + $0x10] sm:$0xff]  }
 0x8ed   : > { %3412 = vmatprep.subr.mxu1 %v4047_v30 }
 0x8ef   : > { %3410 = vmatmul.mubr.msk.f32.vlgmr.msra.gmra.mxu1 %vm1533_vm5, %v2172_v58  ;;  %v3652_v58 = vld [vmem:[%s4504_s13] sm:$0xff]  }
 0x8f0   : > { %3414 = vmatprep.mubr.msk.f32.mxu1 %vm4048_vm3, %v4047_v30 }
 0x9ab   : > { %v2119_v59 = vpop.f32.mrf.mxu1 }
 0x9ac   : > { %v2123_v60 = vpack.c.bf16 %v2119_v59, %v2119_v59 }
 0x9ad   : > { %v3400_v61 = vpop.f32.mrf.mxu1 }
 0x9ae   : > { %3404 = vmatmul.mubr.msk.bf16.vlgmr.msra.gmra.mxu0 %vm1533_vm5, %v2123_v60 }
 0x9af   : > { %v2245_v62 = vpop.f32.mrf.mxu1  ;;  %3447 = vmatprep.mubr.msk.bf16.mxu0 %vm4048_vm3, %v4047_v30  ;;  %3432 = vmatpush3.bf16.msra.mxu0 %v3645_v50 }
 0x9b0   : > { %v2249_v63 = vmul.f32 0.35355338, %v2245_v62  ;;  %3433 = vmatprep.subr.bf16.mxu0 %v4047_v30 }
 0x9b1   : > { %v3411_v0 = vpop.f32.mrf.mxu1 }
 0x9b2   : > { %v2250_v1 = vsel %vm1533_vm5, %v2249_v63, -inf }
 0x9b3   : > { %2251 = vmax.xlane.f32.xlu0 %v2250_v1  ;;  %3434 = vmatpush3.bf16.msra.mxu0 %v3646_v51 }
 0x9b4   : > { %3435 = vmatprep.subr.bf16.mxu0 %v4047_v30 }
 0x9b7   : > { %3436 = vmatpush3.bf16.msra.mxu0 %v3647_v53 }
 0x9b8   : > { %3437 = vmatprep.subr.bf16.mxu0 %v4047_v30 }
 0x9bb   : > { %3438 = vmatpush3.bf16.msra.mxu0 %v3648_v54 }
 0x9bc   : > { %3439 = vmatprep.subr.bf16.mxu0 %v4047_v30 }
 0x9bf   : > { %3440 = vmatpush3.bf16.msra.mxu0 %v3649_v55 }
 0x9c0   : > { %3441 = vmatprep.subr.bf16.mxu0 %v4047_v30 }
 0x9c3   : > { %3442 = vmatpush3.bf16.msra.mxu0 %v3650_v56 }
 0x9c4   : > { %3443 = vmatprep.subr.bf16.mxu0 %v4047_v30 }
 0x9c7   : > { %3444 = vmatpush3.bf16.msra.mxu0 %v3651_v57 }
 0x9c8   : > { %3445 = vmatprep.subr.bf16.mxu0 %v4047_v30 }
 0x9cb   : > { %3446 = vmatpush3.bf16.msra.mxu0 %v3652_v58 }
 0xa3c   : > { %v2252_v2 = vpop.xlane.xlu0 %2251 }
 0xa3d   : > { %v2253_v3 = vsub.f32 %v2249_v63, %v2252_v2 }
 0xa3f   : > { %v2254_v4 = vmul.f32 1.442695, %v2253_v3 }
 0xa41   : > { %3665 = vpow2.f32 %v2254_v4 }
 0xa4e   : > { %v3666_v5 = vpop.eup %3665 }
 0xa4f   : > { %v2256_v6 = vsel %vm1533_vm5, %v3666_v5, 0.0 }
 0xa50   : > { %2257 = vadd.xlane.f32.xlu1 %v2256_v6 }
 0xa61   : > { %2261 = vrot.lane.b32.xlu1 %v4580_v52, %s4051_s17  ;;  %v1532_v52 = vld [vmem:[%s4477_s6 + $0xc] sm:$0xf] }
 0xa62   : > { %v2342_v17 = vsel %vm1867_vm6, %v1532_v52, 0 }
 0xa6e   : > { %v2164_v8 = vpop.f32.mrf.mxu0 }
 0xa6f   : > { %v2170_v9 = vadd.f32 %v2164_v8, %v1952_v7  ;;  %v3247_v8 = vld [vmem:[%s1226_s27] ss:$0 sm:$0xff] }
 0xa70   : > { %v3405_v10 = vpop.f32.mrf.mxu0 }
 0xa72   : > { %v2167_v11 = vpop.f32.mrf.mxu0 }
 0xa74   : > { %v3406_v12 = vpop.f32.mrf.mxu0 }
 0xad9   : > { %v2258_v13 = vpop.xlane.xlu1 %2257 }
 0xada   : > { %3667 = vrcp.f32 %v2258_v13 }
 0xadd   : > { %v2262_v14 = vpop.permute.xlu1 %2261 }
 0xade   : > { %3413 = vmatpush3.msra.mxu1 %v2262_v14 }
 0xadf   : > { %3417 = vmatprep.subr.bf16.mxu1 %v4047_v30 }
 0xae7   : > { %v3668_v15 = vpop.eup %3667 }
 0xae8   : > { %v2260_v16 = vmul.f32 %v3668_v15, %v3666_v5 }
 0xaea   : > { %3415 = vmatmul.mubr.msk.f32.vlgmr.msra.gmra.mxu1 %vm1533_vm5, %v2260_v16 }
 0xaeb   : > { %3419 = vmatprep.mubr.msk.bf16.mxu1 %vm4048_vm3, %v4047_v30  ;;  %3418 = vmatpush3.bf16.msra.mxu1 %v2342_v17 }
 0xaec   : > { %3423 = vmatprep.subr.bf16.mxu1 %v4047_v30 }
 0xbaa   : > { %v2333_v18 = vpop.f32.mrf.mxu1 }
 0xbab   : > { %v2337_v19 = vpack.c.bf16 %v2333_v18, %v2333_v18 }
 0xbac   : > { %v3416_v20 = vpop.f32.mrf.mxu1 }
 0xbad   : > { %3420 = vmatmul.mubr.msk.bf16.vlgmr.msra.gmra.mxu1 %vm1533_vm5, %v2337_v19 }
 0xbae   : > { %3427 = vmatprep.mubr.msk.bf16.mxu1 %vm4048_vm3, %v4047_v30  ;;  %3424 = vmatpush3.bf16.msra.mxu1 %v3643_v37 }
 0xbaf   : > { %3425 = vmatprep.subr.bf16.mxu1 %v4047_v30 }
 0xbb2   : > { %3426 = vmatpush3.bf16.msra.mxu1 %v3644_v38 }
 0xc6d   : > { %v2378_v21 = vpop.f32.mrf.mxu1 }
 0xc6e   : > { %v2384_v23 = vadd.f32 %v2378_v21, %v2170_v9 }
 0xc6f   : > { %v3421_v24 = vpop.f32.mrf.mxu1 }
 0xc70   : > { %v2392_v25 = vadd.f32 %v3240_v22, %v2384_v23  ;;  %v3256_v24 = vld [vmem:[%s1229_s1] ss:$0 sm:$0xff] }
 0xc71   : > { %v2381_v26 = vpop.f32.mrf.mxu1 }
 0xc72   : > { %v2393_v27 = vadd.f32 %v2392_v25, %v4534_v32  ;;  %v3257_v26 = vld [vmem:[%s1232_s15] ss:$0 sm:$0xff]  ;;  %s4951_s15 = sld [smem:[#allocation61_spill]] (!%p3258_p0) }
 0xc73   : > { %v3422_v28 = vpop.f32.mrf.mxu1 }
 0xc74   : > { %v2396_v29 = vsel %vm1359_vm4, %v2393_v27, 0.0 }
 0xc75   : > { %2397 = vadd.xlane.f32.xlu1 %v2396_v29 }
 0xcfe   : > { %v2398_v31 = vpop.xlane.xlu1 %2397 }
 0xcff   : > { %v2400_v33 = vmul.f32 0.03125, %v2398_v31 }
 0xd01   : > { %v2401_v34 = vsub.f32 %v2393_v27, %v2400_v33 }
 0xd03   : > { %v2402_v35 = vmul.f32 %v2401_v34, %v2401_v34 }
 0xd05   : > { %v2403_v36 = vsel %vm1359_vm4, %v2402_v35, 0.0 }
 0xd06   : > { %2404 = vadd.xlane.f32.xlu0 %v2403_v36 }
 0xd8f   : > { %v2405_v32 = vpop.xlane.xlu0 %2404 }
 0xd90   : > { %v2406_v39 = vmul.f32 0.03125, %v2405_v32 }
 0xd92   : > { %v2407_v40 = vadd.f32 1e-05, %v2406_v39 }
 0xd94   : > { %3669 = vrsqrt.f32 %v2407_v40 }
 0xda1   : > { %v3670_v41 = vpop.eup %3669 }
 0xda2   : > { %v2409_v43 = vmul.f32 %v3670_v41, %v2401_v34 }
 0xda4   : > { %v2416_v46 = vmul.f32 %v3241_v42, %v2409_v43 }
 0xda6   : > { %v2423_v48 = vadd.f32 %v3242_v44, %v2416_v46 }
 0xda8   : > { %v2428_v49 = vpack.c.bf16 %v2423_v48, %v2423_v48 }
 0xdaa   : > { %3428 = vmatmul.mubr.msk.bf16.vlgmr.msra.gmra.mxu1 %vm1359_vm4, %v2428_v49 }
 0xe6a   : > { %v2485_v47 = vpop.f32.mrf.mxu1 }
 0xe6b   : > { %v2486_v59 = vadd.f32 %v3243_v45, %v2485_v47 }
 0xe6c   : > { %v3429_v60 = vpop.f32.mrf.mxu1 }
 0xe6d   : > { %v2492_v61 = vmul.f32 0.044715, %v2486_v59  ;;  %v2491_v30 = vmul.f32 0.5, %v2486_v59 }
 0xe6e   : > { %v2488_v62 = vpop.f32.mrf.mxu1 }
 0xe6f   : > { %v2493_v63 = vmul.f32 %v2492_v61, %v2486_v59 }
 0xe70   : > { %v3430_v0 = vpop.f32.mrf.mxu1 }
 0xe71   : > { %v2494_v1 = vmul.f32 %v2493_v63, %v2486_v59 }
 0xe73   : > { %v2495_v2 = vadd.f32 %v2494_v1, %v2486_v59 }
 0xe75   : > { %v2496_v3 = vmul.f32 0.7978846, %v2495_v2 }
 0xe77   : > { %3671 = vtanh.f32 %v2496_v3 }
 0xe84   : > { %v3672_v4 = vpop.eup %3671 }
 0xe85   : > { %v2498_v5 = vadd.f32 1.0, %v3672_v4 }
 0xe87   : > { %v2499_v6 = vmul.f32 %v2498_v5, %v2491_v30 }
 0xe89   : > { %v2516_v7 = vpack.c.bf16 %v2499_v6, %v2499_v6 }
 0xe8b   : > { %3448 = vmatmul.mubr.bf16.vlgmr.msra.gmra.mxu0 %v2516_v7 }
 0xf4b   : > { %v2606_v9 = vpop.f32.mrf.mxu0 }
 0xf4c   : > { %v2607_v10 = vadd.f32 %v3247_v8, %v2606_v9 }
 0xf4d   : > { %v3449_v11 = vpop.f32.mrf.mxu0 }
 0xf4e   : > { %v2612_v12 = vadd.f32 %v2607_v10, %v2423_v48 }
 0xf4f   : > { %v2609_v13 = vpop.f32.mrf.mxu0 }
 0xf50   : > { %v2615_v14 = vsel %vm1359_vm4, %v2612_v12, 0.0 }
 0xf51   : > { %2616 = vadd.xlane.f32.xlu0 %v2615_v14  ;;  %v3450_v15 = vpop.f32.mrf.mxu0 }
 0xfda   : > { %v2617_v16 = vpop.xlane.xlu0 %2616 }
 0xfdb   : > { %v2618_v52 = vmul.f32 0.03125, %v2617_v16 }
 0xfdd   : > { %v2619_v17 = vsub.f32 %v2612_v12, %v2618_v52 }
 0xfdf   : > { %v2620_v18 = vmul.f32 %v2619_v17, %v2619_v17 }
 0xfe1   : > { %v2621_v19 = vsel %vm1359_vm4, %v2620_v18, 0.0 }
 0xfe2   : > { %2622 = vadd.xlane.f32.xlu0 %v2621_v19 }
0x106b   : > { %v2623_v20 = vpop.xlane.xlu0 %2622 }
0x106c   : > { %v2624_v21 = vmul.f32 0.03125, %v2623_v20 }
0x106e   : > { %v2625_v22 = vadd.f32 1e-05, %v2624_v21 }
0x1070   : > { %3673 = vrsqrt.f32 %v2625_v22 }
0x107d   : > { %v3674_v23 = vpop.eup %3673 }
0x107e   : > { %v2627_v25 = vmul.f32 %v3674_v23, %v2619_v17 }
0x1080   : > { %v2634_v27 = vmul.f32 %v3256_v24, %v2627_v25  ;;  %2646 = sbr.rel (%p3258_p0) target bundleno = 5143 (0x1417), region = 172 }
0x1082   : > { %v2641_v28 = vadd.f32 %v3257_v26, %v2634_v27 }
0x1084   : > { %2642 = vst.msk [vmem:[#allocation2] sm:$0xff] %vm1359_vm4, %v2641_v28 }
0x1085   : > { %v2649_v29 = vsel %vm1359_vm4, %v2641_v28, 0.0  ;;  %v3677_v37 = vld [vmem:[%s4951_s15 + $0x8] sm:$0xff]   ;;  %v4052_v38 = vmov 0.0   ;;  %vm4053_vm7 = vmmov 0   ;;  %v3678_v32 = vld [vmem:[%s4951_s15] sm:$0xff]   ;;  %vm2753_vm8 = vcmask 130048  }
0x1086   : > { %2650 = vadd.xlane.f32.xlu0 %v2649_v29  ;;  %3451 = vmatprep.subr.bf16.mxu0 %v4052_v38  ;;  %v3259_v43 = vld [vmem:[%s4952_s28] ss:$0 sm:$0xff]  ;;  %v2745_v51 = vld [vmem:[%s4954_s18 + $0x8] sm:$0xff]  ;;  %v4054_v59 = vmov 0   ;;  %vm2827_vm9 = vcmask 7168   ;;  %vm2860_vm10 = vcmask 253952  }
0x1087   : > { %3455 = vmatprep.mubr.msk.bf16.mxu0 %vm4053_vm7, %v4052_v38  ;;  %3452 = vmatpush3.bf16.msra.mxu0 %v3677_v37  ;;  %v3260_v46 = vld [vmem:[%s4953_s22] ss:$0 sm:$0xff]  ;;  %v3265_v60 = vld [vmem:[#allocation3] ss:$0 sm:$0xff] }
0x1088   : > { %3459 = vmatprep.subr.mxu1 %v4052_v38  ;;  %3453 = vmatprep.subr.bf16.mxu0 %v4052_v38  ;;  %v2744_v53 = vld [vmem:[%s4954_s18] sm:$0xff] }
0x1089   : > { %3463 = vmatprep.mubr.msk.f32.mxu1 %vm4053_vm7, %v4052_v38  ;;  %3460 = vmatpush3.msra.mxu1 %v2745_v51  ;;  %v3261_v54 = vld [vmem:[%s4955_s5] ss:$0 sm:$0xff] }
0x108a   : > { %3461 = vmatprep.subr.mxu1 %v4052_v38  ;;  %3675 = vset.pattern.permute.xlu1 %v4054_v59 }
0x108b   : > { %3454 = vmatpush3.bf16.msra.mxu0 %v3678_v32  ;;  %3462 = vmatpush3.msra.mxu1 %v2744_v53 }
0x108c   : > { %3676 = vset.pattern.permute.xlu0 %v4054_v59 }
0x110f   : > { %v2651_v31 = vpop.xlane.xlu0 %2650 }
0x1110   : > { %v2652_v33 = vmul.f32 0.03125, %v2651_v31 }
0x1112   : > { %v2653_v34 = vsub.f32 %v2641_v28, %v2652_v33 }
0x1114   : > { %v2654_v35 = vmul.f32 %v2653_v34, %v2653_v34 }
0x1116   : > { %v2655_v36 = vsel %vm1359_vm4, %v2654_v35, 0.0 }
0x1117   : > { %2656 = vadd.xlane.f32.xlu0 %v2655_v36 }
0x11a0   : > { %v2657_v39 = vpop.xlane.xlu0 %2656 }
0x11a1   : > { %v2658_v40 = vmul.f32 0.03125, %v2657_v39 }
0x11a3   : > { %v2659_v41 = vadd.f32 1e-05, %v2658_v40 }
0x11a5   : > { %3679 = vrsqrt.f32 %v2659_v41 }
0x11b2   : > { %v3680_v42 = vpop.eup %3679 }
0x11b3   : > { %v2661_v44 = vmul.f32 %v3680_v42, %v2653_v34 }
0x11b5   : > { %v2668_v48 = vmul.f32 %v3259_v43, %v2661_v44 }
0x11b7   : > { %v2675_v49 = vadd.f32 %v3260_v46, %v2668_v48 }
0x11b9   : > { %v2680_v50 = vpack.c.bf16 %v2675_v49, %v2675_v49 }
0x11bb   : > { %3456 = vmatmul.mubr.msk.bf16.vlgmr.msra.gmra.mxu0 %vm1359_vm4, %v2680_v50 }
0x127b   : > { %v2737_v55 = vpop.f32.mrf.mxu0 }
0x127c   : > { %v2738_v56 = vadd.f32 %v3261_v54, %v2737_v55 }
0x127d   : > { %v3457_v57 = vpop.f32.mrf.mxu0 }
0x127e   : > { %3681 = vtanh.f32 %v2738_v56 }
0x127f   : > { %v2740_v58 = vpop.f32.mrf.mxu0 }
0x1281   : > { %v3458_v45 = vpop.f32.mrf.mxu0 }
0x128b   : > { %v3682_v47 = vpop.eup %3681 }
0x128c   : > { %3464 = vmatmul.mubr.msk.f32.vlgmr.msra.gmra.mxu1 %vm2753_vm8, %v3682_v47 }
0x134c   : > { %v2823_v61 = vpop.f32.mrf.mxu1 }
0x134d   : > { %v2824_v62 = vadd.f32 %v3265_v60, %v2823_v61 }
0x134e   : > { %v3465_v63 = vpop.f32.mrf.mxu1 }
0x134f   : > { %v2828_v0 = vsel %vm2827_vm9, %v2824_v62, -inf }
0x1350   : > { %v2829_v1 = vrot.slane %v2828_v0, 4 }
0x1352   : > { %v2830_v2 = vmax.f32 %v2828_v0, %v2829_v1 }
0x1354   : > { %v2831_v3 = vrot.slane %v2830_v2, 2 }
0x1356   : > { %v2832_v4 = vmax.f32 %v2830_v2, %v2831_v3 }
0x1358   : > { %v2833_v30 = vrot.slane %v2832_v4, 1 }
0x135a   : > { %v2834_v5 = vmax.f32 %v2832_v4, %v2833_v30 }
0x135c   : > { %v2835_v6 = vsub.f32 %v2824_v62, %v2834_v5 }
0x135e   : > { %v2836_v7 = vmul.f32 1.442695, %v2835_v6 }
0x1360   : > { %3683 = vpow2.f32 %v2836_v7 }
0x136d   : > { %v3684_v8 = vpop.eup %3683 }
0x136e   : > { %v2838_v9 = vsel %vm2827_vm9, %v3684_v8, 0.0 }
0x136f   : > { %v2839_v10 = vrot.slane %v2838_v9, 4 }
0x1371   : > { %v2840_v11 = vadd.f32 %v2839_v10, %v2838_v9 }
0x1373   : > { %v2841_v12 = vrot.slane %v2840_v11, 2 }
0x1375   : > { %v2842_v13 = vadd.f32 %v2841_v12, %v2840_v11 }
0x1377   : > { %v2843_v14 = vrot.slane %v2842_v13, 1 }
0x1379   : > { %v2844_v15 = vadd.f32 %v2843_v14, %v2842_v13 }
0x137b   : > { %3685 = vrcp.f32 %v2844_v15 }
0x1388   : > { %v3686_v16 = vpop.eup %3685 }
0x1389   : > { %v2846_v52 = vmul.f32 %v3686_v16, %v3684_v8 }
0x138b   : > { %2849 = vperm.xlu1 %3675, %v2846_v52  }
0x1406   : > { %v2850_v17 = vpop.permute.xlu1 %2849 }
0x1407   : > { %v2852_v18 = vmul.f32 %v2850_v17, %v2675_v49 }
0x1409   : > { %v2853_v19 = vsel %vm1359_vm4, %v2852_v18, 0.0 }
0x140a   : > { %v2854_v20 = vrot.slane %v2853_v19, 4 }
0x140c   : > { %v2855_v21 = vadd.f32 %v2854_v20, %v2853_v19 }
0x140e   : > { %v2856_v22 = vrot.slane %v2855_v21, 2 }
0x1410   : > { %v2857_v23 = vadd.f32 %v2856_v22, %v2855_v21 }
0x1412   : > { %v2858_v24 = vrot.slane %v2857_v23, 1 }
0x1414   : > { %v2859_v25 = vadd.f32 %v2858_v24, %v2857_v23 }
0x1416   : > { %2861 = vst.msk [vmem:[%s4519_s21] sm:$0x1] %vm2860_vm10, %v2859_v25 }
0x1417 PF: > { %s4956_s19 = sld [smem:[#allocation26_spill]]  ;;  %s2875_s29 = sshll.u32 %s4519_s21, 4  ;;  %s2876_s29 = int_to_ptr.vmem [resolvable:$true] %s2875_s29 }
0x1418   : > { %s4957_s13 = sld [smem:[#allocation30_spill]]  ;;  %s4960_s3 = sand.u32 1, %s3999_s30  }
0x1419   : > { %s4958_s0 = sld [smem:[#allocation64_spill]]  ;;  %s2863_s1 = scalar_lea.sflag [#allocation6], %s4960_s3 }
0x141a   : > { %s3903_s12 = scalar_lea.vmem %s2876_s29, 16  ;;  %s4055_s11 = smov [#allocation16]  }
0x141b   : > { %p3904_p13 = scmp.ne.s32.totalorder %s2876_s29, %s3903_s12  ;;  %s3907_s2 = sshll.u32 %s4055_s11, 4  ;;  %s3908_s2 = int_to_ptr.vmem [resolvable:$false] %s3907_s2 }
0x141c   : > { %s3909_s23 = scalar_lea.vmem %s3908_s2, 32  ;;  %p3910_p8 = scmp.lt.s32.totalorder %s2876_s29, %s3908_s2 }
0x141d   : > { %s3267_s24 = sshll.u32 %s4956_s19, 4  ;;  %p3911_p9 = scmp.lt.s32.totalorder %s3909_s23, %s3903_s12 }
0x141e   : > { %p4961_p1 = scmp.ne.s32.totalorder %s4957_s13, 0 }
0x141f   : > { %s4959_s8 = smov %s4958_s0  ;;  %s2873_s7 = scalar_lea.hbm %s4958_s0, %s3267_s24 }
0x1420   : > { %p3905_p5 = pnand %p3904_p13, %p4961_p1  ;;  %p3912_p4 = por %p3911_p9, %p3910_p8 }
0x1422   : > { %p3906_p6 = pneg %p3905_p5 }
0x1424   : > { %p3913_p3 = pnand %p3912_p4, %p3906_p6 }
0x1426   : > { %3916 = shalt.err (!%p3913_p3)
}
0x1427   : > { %s3917_s17 = scalar_lea.hbm %s2873_s7, 16  ;;  %s3921_s16 = scalar_lea.hbm %s4959_s8, 32 }
0x1428   : > { %p3918_p12 = scmp.ne.s32.totalorder %s2873_s7, %s3917_s17  ;;  %p3922_p10 = scmp.lt.s32.totalorder %s2873_s7, %s4959_s8 }
0x1429   : > { %p3923_p2 = scmp.lt.s32.totalorder %s3921_s16, %s3917_s17 }
0x142a   : > { %p3919_p7 = pnand %p3918_p12, %p4961_p1 }
0x142b   : > { %p3924_p0 = por %p3923_p2, %p3922_p10 }
0x142c   : > { %p3920_p11 = pneg %p3919_p7 }
0x142e   : > { %p3925_p13 = pnand %p3924_p0, %p3920_p11 }
0x1430   : > { %3928 = shalt.err (!%p3925_p13)
}
0x1431   : > { %3490 = dma.vmem_to_hbm [thread:$0]  (%p4961_p1), %s2876_s29, 16, %s2873_s7, %s2863_s1  }
0x1432 PF: > { %s4962_s25 = sld [smem:[#allocation29_spill]] }
0x1433   : > { %s4963_s6 = sld [smem:[#allocation22_spill]] }
0x1434   : > { %s4964_s14 = sld [smem:[#allocation31_spill]] }
0x1438   : > { %p3531_p5 = scmp.ge.s32.totalorder %s4962_s25, 2 }
0x1439   : > { %s2887_s26 = sand.u32 1, %s4963_s6  }
0x143a   : > { %p4965_p6 = scmp.ne.s32.totalorder %s4964_s14, 0  ;;  %s2888_s9 = scalar_lea.sflag [#allocation6], %s2887_s26 }
0x143c   : > { %p3519_p8 = pnand %p3531_p5, %p4965_p6 }
0x143e   : > { %p3520_p9 = pneg %p3519_p8 }
0x1440   : > { %3990 = dma.done.wait (%p3520_p9), %s2888_s9, 16  }
0x1441   : > { %3992 = vsyncadd (%p3520_p9), %s2888_s9, 4294967280  ;;  %s46_s7 = sadd.s32 1, %s4962_s25   ;;  %s4966_s10 = sld [smem:[#allocation23_spill]] }
0x1442   : > { %p43_p4 = scmp.ge.s32.totalorder %s46_s7, 6   ;;  %s4967_s3 = sld [smem:[#allocation35_spill]] }
0x1443   : > { %s4968_s6 = sld [smem:[#allocation24_spill]]  ;;  %s4975_s9 = smov %s3999_s30 }
0x1444   : > { %s4969_s5 = sld [smem:[#allocation25_spill]] }
0x1445   : > { %s4970_s0 = sld [smem:[#allocation34_spill]] }
0x1446   : > { %s4971_s11 = sld [smem:[#allocation27_spill]]  ;;  %45 = sbr.rel (!%p43_p4) target bundleno = 39 (0x27), region = 272 }
0x1447   : > { %s4972_s27 = sld [smem:[#allocation28_spill]]  ;;  %s4976_s30 = smov %s4966_s10 }
0x1448   : > { %s4973_s29 = sld [smem:[#allocation32_spill]] }
0x1449   : > { %s4974_s2 = sld [smem:[#allocation33_spill]] }
0x144a   : > { %s4977_s10 = smov %s4969_s5 }
0x144b   :  { %2892 = vsyncpa [#allocation5], 1 }
0x144c   :  { %2894 = vsyncpa [#allocation5 + $0x1], 1 }
0x144d   :  { %2895 = vsyncpa [#allocation8], 1 }
0x144e   :  { %2896 = vsyncpa [#allocation11], 1 }
0x144f   :  { %2897 = vsyncpa [#allocation6], 1 }
0x1450   :  { %2899 = vsyncpa [#allocation6 + $0x1], 1 }

</bundles_post_ra>
